<compile_context>
chip_gen: v7x
topology: tpu7x:2x2x1
jax: 0.10.0
libtpu: 0.0.40
codegen_flags: <defaults>
</compile_context>

<pallas_src>
import functools

import jax
import jax.numpy as jnp
from jax import lax
from jax.experimental import pallas as pl
from jax.experimental.pallas import tpu as pltpu

_LANES = 128                              # lane-dense minor dim of the partial-sum output
_VMEM_BUDGET_BYTES = 24 * 1024 * 1024     # conservative (fits v5e/v6e/v7x scoped VMEM)


def _erode_image_sum(x, t, masks, *, alpha, erosions, h, w):
    """Full erosion loop for one (h, w) image.

    Returns the (1, 1) weighted sum  sum_k (k+1)^alpha * sum(erosion_k),
    i.e. exactly sum(eroted) of the reference implementation.
    """
    m_h1, m_h2, m_w1, m_w2 = masks
    n_elems = float(h * w)

    bound = (x - t) ** 2
    total = jnp.zeros((1, 1), jnp.float32)

    # `erosions` is a small static int (10); each step depends on the previous
    # one, so a fully unrolled Python loop gives the scheduler full visibility.
    for k in range(erosions):
        # 3x3 cross convolution with zero ("constant", cval=0) boundaries:
        #   dilation = 0.2 * (center + up + down + left + right)
        up = jnp.where(m_h1, pltpu.roll(bound, 1, axis=0), 0.0)
        dn = jnp.where(m_h2, pltpu.roll(bound, h - 1, axis=0), 0.0)
        lf = jnp.where(m_w1, pltpu.roll(bound, 1, axis=1), 0.0)
        rt = jnp.where(m_w2, pltpu.roll(bound, w - 1, axis=1), 0.0)
        dilation = 0.2 * (bound + up + dn + lf + rt)

        erosion = jnp.maximum(dilation - 0.5, 0.0)

        # Per-image max / min / sum: lane reduce first (big), then sublanes.
        emax = jnp.max(jnp.max(erosion, axis=1, keepdims=True), axis=0, keepdims=True)
        emin = jnp.min(jnp.min(erosion, axis=1, keepdims=True), axis=0, keepdims=True)
        esum = jnp.sum(jnp.sum(erosion, axis=1, keepdims=True), axis=0, keepdims=True)

        ptp = emax - emin
        has_range = ptp != 0.0
        inv = pl.reciprocal(jnp.where(has_range, ptp, 1.0), approx=False)

        # Next iterate: normalized erosion (matches numpy .ptp() branch).
        bound = jnp.where(has_range, (erosion - emin) * inv, erosion)
        # Its sum, derived algebraically instead of re-reducing the normalized array.
        step_sum = jnp.where(has_range, (esum - n_elems * emin) * inv, esum)

        total = total + step_sum * float((k + 1) ** alpha)

    return total  # (1, 1)


def _hausdorff_er_kernel(pred_ref, target_ref, sum_ref, *, alpha, erosions, tb, h, w):
    # Boundary masks, built once per grid step.  A rolled-in value is a valid
    # +/-1 neighbour iff its source index differs from its destination index by
    # exactly 1; the wrapped row/column differs by (n-1) and is masked to zero
    # (scipy convolve mode='constant', cval=0).  Deriving the masks from rolled
    # iotas makes this independent of the roll direction convention.
    row = lax.broadcasted_iota(jnp.int32, (h, w), 0)
    col = lax.broadcasted_iota(jnp.int32, (h, w), 1)
    m_h1 = jnp.abs(pltpu.roll(row, 1, axis=0) - row) == 1
    m_h2 = jnp.abs(pltpu.roll(row, h - 1, axis=0) - row) == 1
    m_w1 = jnp.abs(pltpu.roll(col, 1, axis=1) - col) == 1
    m_w2 = jnp.abs(pltpu.roll(col, w - 1, axis=1) - col) == 1
    masks = (m_h1, m_h2, m_w1, m_w2)

    # tb images per grid step (static unroll): amortizes per-grid-step overhead
    # and exposes independent erosion dependency chains to the scheduler.
    for i in range(tb):
        x = pred_ref[i].astype(jnp.float32)       # (h, w)
        t = target_ref[i].astype(jnp.float32)
        s = _erode_image_sum(x, t, masks, alpha=alpha, erosions=erosions, h=h, w=w)
        # lane-dense (1, 128) store of the per-image partial sum
        sum_ref[i] = jnp.broadcast_to(s, (1, _LANES))


def _pick_images_per_step(b, h, w, in_bytes):
    """Largest divisor of b (<= 8) whose working set fits a conservative VMEM
    budget, keeping >= 2 grid steps when possible so both v7x cores get work."""
    img_f32 = h * w * 4
    img_in = h * w * in_bytes
    best = 1
    for tb in range(1, min(b, 8) + 1):
        if b % tb != 0:
            continue
        if b >= 2 and b // tb < 2:
            continue
        # 2 inputs x 2 pipeline buffers (native dtype) + ~8 live f32 temps/image
        need = tb * (4 * img_in + 8 * img_f32)
        if need <= _VMEM_BUDGET_BYTES:
            best = tb
    return best


def hausdorff_er_loss(pred, target, *, alpha=2.0, erosions=10):
    """pred, target: (B, 1, H, W) binary masks (any float dtype). Returns scalar loss."""
    assert pred.ndim == 4 and target.ndim == 4, "Only the 2D (B,1,H,W) case is implemented"
    # TODO(synk): 3D (B,1,X,Y,Z) branch with the 7-point (1/7) kernel not implemented.
    assert pred.shape == target.shape, "Prediction and target need the same shape"
    B, C, H, W = pred.shape
    assert C == 1, "module uses a single binary channel"
    assert H >= 3 and W >= 3, "images smaller than 3x3 are not supported"

    p = pred.reshape(B, H, W)      # keep native dtype (e.g. bf16); cast in-kernel
    t = target.reshape(B, H, W)

    tb = _pick_images_per_step(B, H, W, p.dtype.itemsize)
    # TODO(synk): tile along H (two-pass per-image min/max/sum) for single images
    # whose working set exceeds the VMEM budget.

    kernel = functools.partial(
        _hausdorff_er_kernel,
        alpha=float(alpha), erosions=int(erosions), tb=tb, h=H, w=W,
    )

    sums = pl.pallas_call(
        kernel,
        out_shape=jax.ShapeDtypeStruct((B, 1, _LANES), jnp.float32),
        grid=(B // tb,),
        in_specs=[
            pl.BlockSpec((tb, H, W), lambda b: (b, 0, 0)),
            pl.BlockSpec((tb, H, W), lambda b: (b, 0, 0)),
        ],
        out_specs=pl.BlockSpec((tb, 1, _LANES), lambda b: (b, 0, 0)),
        compiler_params=pltpu.CompilerParams(
            dimension_semantics=("parallel",),
            vmem_limit_bytes=32 * 1024 * 1024,
        ),
    )(p, t)

    # loss = eroted.mean() over (B, 1, H, W)
    return jnp.sum(sums[:, 0, 0]) / (B * H * W)


if __name__ == "__main__":
    key = jax.random.PRNGKey(0)
    k1, k2 = jax.random.split(key)

    B, C, H, W = 2, 1, 16, 16
    # Binary fg/bg masks (1 - fg, 0 - bg), as the module expects. bf16 is exact
    # for {0, 1} and halves HBM read traffic into the kernel.
    pred = (jax.random.uniform(k1, (B, C, H, W)) > 0.5).astype(jnp.bfloat16)
    target = (jax.random.uniform(k2, (B, C, H, W)) > 0.5).astype(jnp.bfloat16)

    loss = hausdorff_er_loss(pred, target, alpha=2.0, erosions=10)
    jax.block_until_ready(loss)
    print("KERNEL_OK")
</pallas_src>

<mosaic_0001>
module attributes {stable_mosaic.version = 11 : i64} {
  func.func @_hausdorff_er_kernel(%arg0: i32, %arg1: memref<1x16x16xbf16, #tpu.memory_space<vmem>>, %arg2: memref<1x16x16xbf16, #tpu.memory_space<vmem>>, %arg3: memref<1x1x128xf32, #tpu.memory_space<vmem>>) attributes {dimension_semantics = [#tpu.dimension_semantics<parallel>], iteration_bounds = array<i64: 2>, scalar_prefetch = 0 : i64, scratch_operands = 0 : i64, tpu.core_type = #tpu.core_type<tc>, window_params = [{transform_indices = @transform_0, window_bounds = array<i64: 1, 16, 16>}, {transform_indices = @transform_1, window_bounds = array<i64: 1, 16, 16>}, {transform_indices = @transform_2, window_bounds = array<i64: 1, 1, 128>}]} {
    %0 = tpu.iota {dimensions = array<i32: 0>} : vector<16x16xi32>
    %1 = tpu.iota {dimensions = array<i32: 1>} : vector<16x16xi32>
    %c1_i32 = arith.constant 1 : i32
    %2 = tpu.dynamic_rotate %0 by %c1_i32 dim 0 : vector<16x16xi32>, i32 -> vector<16x16xi32>
    %3 = arith.subi %2, %0 : vector<16x16xi32>
    %4 = math.absi %3 : vector<16x16xi32>
    %c1_i32_0 = arith.constant 1 : i32
    %5 = vector.broadcast %c1_i32_0 : i32 to vector<16x16xi32>
    %6 = arith.cmpi eq, %4, %5 : vector<16x16xi32>
    %c15_i32 = arith.constant 15 : i32
    %7 = tpu.dynamic_rotate %0 by %c15_i32 dim 0 : vector<16x16xi32>, i32 -> vector<16x16xi32>
    %8 = arith.subi %7, %0 : vector<16x16xi32>
    %9 = math.absi %8 : vector<16x16xi32>
    %c1_i32_1 = arith.constant 1 : i32
    %10 = vector.broadcast %c1_i32_1 : i32 to vector<16x16xi32>
    %11 = arith.cmpi eq, %9, %10 : vector<16x16xi32>
    %c1_i32_2 = arith.constant 1 : i32
    %12 = tpu.dynamic_rotate %1 by %c1_i32_2 dim 1 : vector<16x16xi32>, i32 -> vector<16x16xi32>
    %13 = arith.subi %12, %1 : vector<16x16xi32>
    %14 = math.absi %13 : vector<16x16xi32>
    %c1_i32_3 = arith.constant 1 : i32
    %15 = vector.broadcast %c1_i32_3 : i32 to vector<16x16xi32>
    %16 = arith.cmpi eq, %14, %15 : vector<16x16xi32>
    %c15_i32_4 = arith.constant 15 : i32
    %17 = tpu.dynamic_rotate %1 by %c15_i32_4 dim 1 : vector<16x16xi32>, i32 -> vector<16x16xi32>
    %18 = arith.subi %17, %1 : vector<16x16xi32>
    %19 = math.absi %18 : vector<16x16xi32>
    %c1_i32_5 = arith.constant 1 : i32
    %20 = vector.broadcast %c1_i32_5 : i32 to vector<16x16xi32>
    %21 = arith.cmpi eq, %19, %20 : vector<16x16xi32>
    %c0 = arith.constant 0 : index
    %c0_6 = arith.constant 0 : index
    %c0_7 = arith.constant 0 : index
    %22 = vector.load %arg1[%c0, %c0_6, %c0_7] : memref<1x16x16xbf16, #tpu.memory_space<vmem>>, vector<1x16x16xbf16>
    %23 = vector.shape_cast %22 : vector<1x16x16xbf16> to vector<16x16xbf16>
    %24 = arith.extf %23 : vector<16x16xbf16> to vector<16x16xf32>
    %c0_8 = arith.constant 0 : index
    %c0_9 = arith.constant 0 : index
    %c0_10 = arith.constant 0 : index
    %25 = vector.load %arg2[%c0_8, %c0_9, %c0_10] : memref<1x16x16xbf16, #tpu.memory_space<vmem>>, vector<1x16x16xbf16>
    %26 = vector.shape_cast %25 : vector<1x16x16xbf16> to vector<16x16xbf16>
    %27 = arith.extf %26 : vector<16x16xbf16> to vector<16x16xf32>
    %28 = arith.subf %24, %27 : vector<16x16xf32>
    %29 = arith.mulf %28, %28 : vector<16x16xf32>
    %cst = arith.constant 0.000000e+00 : f32
    %30 = vector.broadcast %cst : f32 to vector<1x1xf32>
    %c1_i32_11 = arith.constant 1 : i32
    %31 = tpu.dynamic_rotate %29 by %c1_i32_11 dim 0 : vector<16x16xf32>, i32 -> vector<16x16xf32>
    %cst_12 = arith.constant 0.000000e+00 : f32
    %32 = vector.broadcast %cst_12 : f32 to vector<16x16xf32>
    %33 = arith.select %6, %31, %32 : vector<16x16xi1>, vector<16x16xf32>
    %c15_i32_13 = arith.constant 15 : i32
    %34 = tpu.dynamic_rotate %29 by %c15_i32_13 dim 0 : vector<16x16xf32>, i32 -> vector<16x16xf32>
    %cst_14 = arith.constant 0.000000e+00 : f32
    %35 = vector.broadcast %cst_14 : f32 to vector<16x16xf32>
    %36 = arith.select %11, %34, %35 : vector<16x16xi1>, vector<16x16xf32>
    %c1_i32_15 = arith.constant 1 : i32
    %37 = tpu.dynamic_rotate %29 by %c1_i32_15 dim 1 : vector<16x16xf32>, i32 -> vector<16x16xf32>
    %cst_16 = arith.constant 0.000000e+00 : f32
    %38 = vector.broadcast %cst_16 : f32 to vector<16x16xf32>
    %39 = arith.select %16, %37, %38 : vector<16x16xi1>, vector<16x16xf32>
    %c15_i32_17 = arith.constant 15 : i32
    %40 = tpu.dynamic_rotate %29 by %c15_i32_17 dim 1 : vector<16x16xf32>, i32 -> vector<16x16xf32>
    %cst_18 = arith.constant 0.000000e+00 : f32
    %41 = vector.broadcast %cst_18 : f32 to vector<16x16xf32>
    %42 = arith.select %21, %40, %41 : vector<16x16xi1>, vector<16x16xf32>
    %43 = arith.addf %29, %33 : vector<16x16xf32>
    %44 = arith.addf %43, %36 : vector<16x16xf32>
    %45 = arith.addf %44, %39 : vector<16x16xf32>
    %46 = arith.addf %45, %42 : vector<16x16xf32>
    %cst_19 = arith.constant 2.000000e-01 : f32
    %47 = vector.broadcast %cst_19 : f32 to vector<16x16xf32>
    %48 = arith.mulf %47, %46 : vector<16x16xf32>
    %cst_20 = arith.constant 5.000000e-01 : f32
    %49 = vector.broadcast %cst_20 : f32 to vector<16x16xf32>
    %50 = arith.subf %48, %49 : vector<16x16xf32>
    %cst_21 = arith.constant 0.000000e+00 : f32
    %51 = vector.broadcast %cst_21 : f32 to vector<16x16xf32>
    %52 = arith.maximumf %50, %51 : vector<16x16xf32>
    %cst_22 = arith.constant dense<0xFF800000> : vector<16xf32>
    %53 = vector.multi_reduction <maximumf>, %52, %cst_22 [1] : vector<16x16xf32> to vector<16xf32>
    %54 = vector.shape_cast %53 : vector<16xf32> to vector<16x1xf32>
    %cst_23 = arith.constant dense<0xFF800000> : vector<1xf32>
    %55 = vector.multi_reduction <maximumf>, %54, %cst_23 [0] : vector<16x1xf32> to vector<1xf32>
    %56 = vector.shape_cast %55 : vector<1xf32> to vector<1x1xf32>
    %cst_24 = arith.constant dense<0x7F800000> : vector<16xf32>
    %57 = vector.multi_reduction <minimumf>, %52, %cst_24 [1] : vector<16x16xf32> to vector<16xf32>
    %58 = vector.shape_cast %57 : vector<16xf32> to vector<16x1xf32>
    %cst_25 = arith.constant dense<0x7F800000> : vector<1xf32>
    %59 = vector.multi_reduction <minimumf>, %58, %cst_25 [0] : vector<16x1xf32> to vector<1xf32>
    %60 = vector.shape_cast %59 : vector<1xf32> to vector<1x1xf32>
    %cst_26 = arith.constant dense<0.000000e+00> : vector<16xf32>
    %61 = vector.multi_reduction <add>, %52, %cst_26 [1] : vector<16x16xf32> to vector<16xf32>
    %62 = vector.shape_cast %61 : vector<16xf32> to vector<16x1xf32>
    %cst_27 = arith.constant dense<0.000000e+00> : vector<1xf32>
    %63 = vector.multi_reduction <add>, %62, %cst_27 [0] : vector<16x1xf32> to vector<1xf32>
    %64 = vector.shape_cast %63 : vector<1xf32> to vector<1x1xf32>
    %65 = arith.subf %56, %60 : vector<1x1xf32>
    %cst_28 = arith.constant 0.000000e+00 : f32
    %66 = vector.broadcast %cst_28 : f32 to vector<1x1xf32>
    %67 = arith.cmpf one, %65, %66 : vector<1x1xf32>
    %cst_29 = arith.constant 1.000000e+00 : f32
    %68 = vector.broadcast %cst_29 : f32 to vector<1x1xf32>
    %69 = arith.select %67, %65, %68 : vector<1x1xi1>, vector<1x1xf32>
    %70 = tpu.reciprocal %69 : vector<1x1xf32> -> vector<1x1xf32>
    %71 = vector.broadcast %60 : vector<1x1xf32> to vector<16x16xf32>
    %72 = arith.subf %52, %71 : vector<16x16xf32>
    %73 = vector.broadcast %70 : vector<1x1xf32> to vector<16x16xf32>
    %74 = arith.mulf %72, %73 : vector<16x16xf32>
    %75 = vector.shape_cast %67 : vector<1x1xi1> to vector<1x1xi1>
    %76 = vector.broadcast %75 : vector<1x1xi1> to vector<16x16xi1>
    %77 = arith.select %76, %74, %52 : vector<16x16xi1>, vector<16x16xf32>
    %cst_30 = arith.constant 2.560000e+02 : f32
    %78 = vector.broadcast %cst_30 : f32 to vector<1x1xf32>
    %79 = arith.mulf %78, %60 : vector<1x1xf32>
    %80 = arith.subf %64, %79 : vector<1x1xf32>
    %81 = arith.mulf %80, %70 : vector<1x1xf32>
    %82 = arith.select %67, %81, %64 : vector<1x1xi1>, vector<1x1xf32>
    %cst_31 = arith.constant 1.000000e+00 : f32
    %83 = vector.broadcast %cst_31 : f32 to vector<1x1xf32>
    %84 = arith.mulf %82, %83 : vector<1x1xf32>
    %85 = arith.addf %30, %84 : vector<1x1xf32>
    %c1_i32_32 = arith.constant 1 : i32
    %86 = tpu.dynamic_rotate %77 by %c1_i32_32 dim 0 : vector<16x16xf32>, i32 -> vector<16x16xf32>
    %cst_33 = arith.constant 0.000000e+00 : f32
    %87 = vector.broadcast %cst_33 : f32 to vector<16x16xf32>
    %88 = arith.select %6, %86, %87 : vector<16x16xi1>, vector<16x16xf32>
    %c15_i32_34 = arith.constant 15 : i32
    %89 = tpu.dynamic_rotate %77 by %c15_i32_34 dim 0 : vector<16x16xf32>, i32 -> vector<16x16xf32>
    %cst_35 = arith.constant 0.000000e+00 : f32
    %90 = vector.broadcast %cst_35 : f32 to vector<16x16xf32>
    %91 = arith.select %11, %89, %90 : vector<16x16xi1>, vector<16x16xf32>
    %c1_i32_36 = arith.constant 1 : i32
    %92 = tpu.dynamic_rotate %77 by %c1_i32_36 dim 1 : vector<16x16xf32>, i32 -> vector<16x16xf32>
    %cst_37 = arith.constant 0.000000e+00 : f32
    %93 = vector.broadcast %cst_37 : f32 to vector<16x16xf32>
    %94 = arith.select %16, %92, %93 : vector<16x16xi1>, vector<16x16xf32>
    %c15_i32_38 = arith.constant 15 : i32
    %95 = tpu.dynamic_rotate %77 by %c15_i32_38 dim 1 : vector<16x16xf32>, i32 -> vector<16x16xf32>
    %cst_39 = arith.constant 0.000000e+00 : f32
    %96 = vector.broadcast %cst_39 : f32 to vector<16x16xf32>
    %97 = arith.select %21, %95, %96 : vector<16x16xi1>, vector<16x16xf32>
    %98 = arith.addf %77, %88 : vector<16x16xf32>
    %99 = arith.addf %98, %91 : vector<16x16xf32>
    %100 = arith.addf %99, %94 : vector<16x16xf32>
    %101 = arith.addf %100, %97 : vector<16x16xf32>
    %cst_40 = arith.constant 2.000000e-01 : f32
    %102 = vector.broadcast %cst_40 : f32 to vector<16x16xf32>
    %103 = arith.mulf %102, %101 : vector<16x16xf32>
    %cst_41 = arith.constant 5.000000e-01 : f32
    %104 = vector.broadcast %cst_41 : f32 to vector<16x16xf32>
    %105 = arith.subf %103, %104 : vector<16x16xf32>
    %cst_42 = arith.constant 0.000000e+00 : f32
    %106 = vector.broadcast %cst_42 : f32 to vector<16x16xf32>
    %107 = arith.maximumf %105, %106 : vector<16x16xf32>
    %cst_43 = arith.constant dense<0xFF800000> : vector<16xf32>
    %108 = vector.multi_reduction <maximumf>, %107, %cst_43 [1] : vector<16x16xf32> to vector<16xf32>
    %109 = vector.shape_cast %108 : vector<16xf32> to vector<16x1xf32>
    %cst_44 = arith.constant dense<0xFF800000> : vector<1xf32>
    %110 = vector.multi_reduction <maximumf>, %109, %cst_44 [0] : vector<16x1xf32> to vector<1xf32>
    %111 = vector.shape_cast %110 : vector<1xf32> to vector<1x1xf32>
    %cst_45 = arith.constant dense<0x7F800000> : vector<16xf32>
    %112 = vector.multi_reduction <minimumf>, %107, %cst_45 [1] : vector<16x16xf32> to vector<16xf32>
    %113 = vector.shape_cast %112 : vector<16xf32> to vector<16x1xf32>
    %cst_46 = arith.constant dense<0x7F800000> : vector<1xf32>
    %114 = vector.multi_reduction <minimumf>, %113, %cst_46 [0] : vector<16x1xf32> to vector<1xf32>
    %115 = vector.shape_cast %114 : vector<1xf32> to vector<1x1xf32>
    %cst_47 = arith.constant dense<0.000000e+00> : vector<16xf32>
    %116 = vector.multi_reduction <add>, %107, %cst_47 [1] : vector<16x16xf32> to vector<16xf32>
    %117 = vector.shape_cast %116 : vector<16xf32> to vector<16x1xf32>
    %cst_48 = arith.constant dense<0.000000e+00> : vector<1xf32>
    %118 = vector.multi_reduction <add>, %117, %cst_48 [0] : vector<16x1xf32> to vector<1xf32>
    %119 = vector.shape_cast %118 : vector<1xf32> to vector<1x1xf32>
    %120 = arith.subf %111, %115 : vector<1x1xf32>
    %cst_49 = arith.constant 0.000000e+00 : f32
    %121 = vector.broadcast %cst_49 : f32 to vector<1x1xf32>
    %122 = arith.cmpf one, %120, %121 : vector<1x1xf32>
    %cst_50 = arith.constant 1.000000e+00 : f32
    %123 = vector.broadcast %cst_50 : f32 to vector<1x1xf32>
    %124 = arith.select %122, %120, %123 : vector<1x1xi1>, vector<1x1xf32>
    %125 = tpu.reciprocal %124 : vector<1x1xf32> -> vector<1x1xf32>
    %126 = vector.broadcast %115 : vector<1x1xf32> to vector<16x16xf32>
    %127 = arith.subf %107, %126 : vector<16x16xf32>
    %128 = vector.broadcast %125 : vector<1x1xf32> to vector<16x16xf32>
    %129 = arith.mulf %127, %128 : vector<16x16xf32>
    %130 = vector.shape_cast %122 : vector<1x1xi1> to vector<1x1xi1>
    %131 = vector.broadcast %130 : vector<1x1xi1> to vector<16x16xi1>
    %132 = arith.select %131, %129, %107 : vector<16x16xi1>, vector<16x16xf32>
    %cst_51 = arith.constant 2.560000e+02 : f32
    %133 = vector.broadcast %cst_51 : f32 to vector<1x1xf32>
    %134 = arith.mulf %133, %115 : vector<1x1xf32>
    %135 = arith.subf %119, %134 : vector<1x1xf32>
    %136 = arith.mulf %135, %125 : vector<1x1xf32>
    %137 = arith.select %122, %136, %119 : vector<1x1xi1>, vector<1x1xf32>
    %cst_52 = arith.constant 4.000000e+00 : f32
    %138 = vector.broadcast %cst_52 : f32 to vector<1x1xf32>
    %139 = arith.mulf %137, %138 : vector<1x1xf32>
    %140 = arith.addf %85, %139 : vector<1x1xf32>
    %c1_i32_53 = arith.constant 1 : i32
    %141 = tpu.dynamic_rotate %132 by %c1_i32_53 dim 0 : vector<16x16xf32>, i32 -> vector<16x16xf32>
    %cst_54 = arith.constant 0.000000e+00 : f32
    %142 = vector.broadcast %cst_54 : f32 to vector<16x16xf32>
    %143 = arith.select %6, %141, %142 : vector<16x16xi1>, vector<16x16xf32>
    %c15_i32_55 = arith.constant 15 : i32
    %144 = tpu.dynamic_rotate %132 by %c15_i32_55 dim 0 : vector<16x16xf32>, i32 -> vector<16x16xf32>
    %cst_56 = arith.constant 0.000000e+00 : f32
    %145 = vector.broadcast %cst_56 : f32 to vector<16x16xf32>
    %146 = arith.select %11, %144, %145 : vector<16x16xi1>, vector<16x16xf32>
    %c1_i32_57 = arith.constant 1 : i32
    %147 = tpu.dynamic_rotate %132 by %c1_i32_57 dim 1 : vector<16x16xf32>, i32 -> vector<16x16xf32>
    %cst_58 = arith.constant 0.000000e+00 : f32
    %148 = vector.broadcast %cst_58 : f32 to vector<16x16xf32>
    %149 = arith.select %16, %147, %148 : vector<16x16xi1>, vector<16x16xf32>
    %c15_i32_59 = arith.constant 15 : i32
    %150 = tpu.dynamic_rotate %132 by %c15_i32_59 dim 1 : vector<16x16xf32>, i32 -> vector<16x16xf32>
    %cst_60 = arith.constant 0.000000e+00 : f32
    %151 = vector.broadcast %cst_60 : f32 to vector<16x16xf32>
    %152 = arith.select %21, %150, %151 : vector<16x16xi1>, vector<16x16xf32>
    %153 = arith.addf %132, %143 : vector<16x16xf32>
    %154 = arith.addf %153, %146 : vector<16x16xf32>
    %155 = arith.addf %154, %149 : vector<16x16xf32>
    %156 = arith.addf %155, %152 : vector<16x16xf32>
    %cst_61 = arith.constant 2.000000e-01 : f32
    %157 = vector.broadcast %cst_61 : f32 to vector<16x16xf32>
    %158 = arith.mulf %157, %156 : vector<16x16xf32>
    %cst_62 = arith.constant 5.000000e-01 : f32
    %159 = vector.broadcast %cst_62 : f32 to vector<16x16xf32>
    %160 = arith.subf %158, %159 : vector<16x16xf32>
    %cst_63 = arith.constant 0.000000e+00 : f32
    %161 = vector.broadcast %cst_63 : f32 to vector<16x16xf32>
    %162 = arith.maximumf %160, %161 : vector<16x16xf32>
    %cst_64 = arith.constant dense<0xFF800000> : vector<16xf32>
    %163 = vector.multi_reduction <maximumf>, %162, %cst_64 [1] : vector<16x16xf32> to vector<16xf32>
    %164 = vector.shape_cast %163 : vector<16xf32> to vector<16x1xf32>
    %cst_65 = arith.constant dense<0xFF800000> : vector<1xf32>
    %165 = vector.multi_reduction <maximumf>, %164, %cst_65 [0] : vector<16x1xf32> to vector<1xf32>
    %166 = vector.shape_cast %165 : vector<1xf32> to vector<1x1xf32>
    %cst_66 = arith.constant dense<0x7F800000> : vector<16xf32>
    %167 = vector.multi_reduction <minimumf>, %162, %cst_66 [1] : vector<16x16xf32> to vector<16xf32>
    %168 = vector.shape_cast %167 : vector<16xf32> to vector<16x1xf32>
    %cst_67 = arith.constant dense<0x7F800000> : vector<1xf32>
    %169 = vector.multi_reduction <minimumf>, %168, %cst_67 [0] : vector<16x1xf32> to vector<1xf32>
    %170 = vector.shape_cast %169 : vector<1xf32> to vector<1x1xf32>
    %cst_68 = arith.constant dense<0.000000e+00> : vector<16xf32>
    %171 = vector.multi_reduction <add>, %162, %cst_68 [1] : vector<16x16xf32> to vector<16xf32>
    %172 = vector.shape_cast %171 : vector<16xf32> to vector<16x1xf32>
    %cst_69 = arith.constant dense<0.000000e+00> : vector<1xf32>
    %173 = vector.multi_reduction <add>, %172, %cst_69 [0] : vector<16x1xf32> to vector<1xf32>
    %174 = vector.shape_cast %173 : vector<1xf32> to vector<1x1xf32>
    %175 = arith.subf %166, %170 : vector<1x1xf32>
    %cst_70 = arith.constant 0.000000e+00 : f32
    %176 = vector.broadcast %cst_70 : f32 to vector<1x1xf32>
    %177 = arith.cmpf one, %175, %176 : vector<1x1xf32>
    %cst_71 = arith.constant 1.000000e+00 : f32
    %178 = vector.broadcast %cst_71 : f32 to vector<1x1xf32>
    %179 = arith.select %177, %175, %178 : vector<1x1xi1>, vector<1x1xf32>
    %180 = tpu.reciprocal %179 : vector<1x1xf32> -> vector<1x1xf32>
    %181 = vector.broadcast %170 : vector<1x1xf32> to vector<16x16xf32>
    %182 = arith.subf %162, %181 : vector<16x16xf32>
    %183 = vector.broadcast %180 : vector<1x1xf32> to vector<16x16xf32>
    %184 = arith.mulf %182, %183 : vector<16x16xf32>
    %185 = vector.shape_cast %177 : vector<1x1xi1> to vector<1x1xi1>
    %186 = vector.broadcast %185 : vector<1x1xi1> to vector<16x16xi1>
    %187 = arith.select %186, %184, %162 : vector<16x16xi1>, vector<16x16xf32>
    %cst_72 = arith.constant 2.560000e+02 : f32
    %188 = vector.broadcast %cst_72 : f32 to vector<1x1xf32>
    %189 = arith.mulf %188, %170 : vector<1x1xf32>
    %190 = arith.subf %174, %189 : vector<1x1xf32>
    %191 = arith.mulf %190, %180 : vector<1x1xf32>
    %192 = arith.select %177, %191, %174 : vector<1x1xi1>, vector<1x1xf32>
    %cst_73 = arith.constant 9.000000e+00 : f32
    %193 = vector.broadcast %cst_73 : f32 to vector<1x1xf32>
    %194 = arith.mulf %192, %193 : vector<1x1xf32>
    %195 = arith.addf %140, %194 : vector<1x1xf32>
    %c1_i32_74 = arith.constant 1 : i32
    %196 = tpu.dynamic_rotate %187 by %c1_i32_74 dim 0 : vector<16x16xf32>, i32 -> vector<16x16xf32>
    %cst_75 = arith.constant 0.000000e+00 : f32
    %197 = vector.broadcast %cst_75 : f32 to vector<16x16xf32>
    %198 = arith.select %6, %196, %197 : vector<16x16xi1>, vector<16x16xf32>
    %c15_i32_76 = arith.constant 15 : i32
    %199 = tpu.dynamic_rotate %187 by %c15_i32_76 dim 0 : vector<16x16xf32>, i32 -> vector<16x16xf32>
    %cst_77 = arith.constant 0.000000e+00 : f32
    %200 = vector.broadcast %cst_77 : f32 to vector<16x16xf32>
    %201 = arith.select %11, %199, %200 : vector<16x16xi1>, vector<16x16xf32>
    %c1_i32_78 = arith.constant 1 : i32
    %202 = tpu.dynamic_rotate %187 by %c1_i32_78 dim 1 : vector<16x16xf32>, i32 -> vector<16x16xf32>
    %cst_79 = arith.constant 0.000000e+00 : f32
    %203 = vector.broadcast %cst_79 : f32 to vector<16x16xf32>
    %204 = arith.select %16, %202, %203 : vector<16x16xi1>, vector<16x16xf32>
    %c15_i32_80 = arith.constant 15 : i32
    %205 = tpu.dynamic_rotate %187 by %c15_i32_80 dim 1 : vector<16x16xf32>, i32 -> vector<16x16xf32>
    %cst_81 = arith.constant 0.000000e+00 : f32
    %206 = vector.broadcast %cst_81 : f32 to vector<16x16xf32>
    %207 = arith.select %21, %205, %206 : vector<16x16xi1>, vector<16x16xf32>
    %208 = arith.addf %187, %198 : vector<16x16xf32>
    %209 = arith.addf %208, %201 : vector<16x16xf32>
    %210 = arith.addf %209, %204 : vector<16x16xf32>
    %211 = arith.addf %210, %207 : vector<16x16xf32>
    %cst_82 = arith.constant 2.000000e-01 : f32
    %212 = vector.broadcast %cst_82 : f32 to vector<16x16xf32>
    %213 = arith.mulf %212, %211 : vector<16x16xf32>
    %cst_83 = arith.constant 5.000000e-01 : f32
    %214 = vector.broadcast %cst_83 : f32 to vector<16x16xf32>
    %215 = arith.subf %213, %214 : vector<16x16xf32>
    %cst_84 = arith.constant 0.000000e+00 : f32
    %216 = vector.broadcast %cst_84 : f32 to vector<16x16xf32>
    %217 = arith.maximumf %215, %216 : vector<16x16xf32>
    %cst_85 = arith.constant dense<0xFF800000> : vector<16xf32>
    %218 = vector.multi_reduction <maximumf>, %217, %cst_85 [1] : vector<16x16xf32> to vector<16xf32>
    %219 = vector.shape_cast %218 : vector<16xf32> to vector<16x1xf32>
    %cst_86 = arith.constant dense<0xFF800000> : vector<1xf32>
    %220 = vector.multi_reduction <maximumf>, %219, %cst_86 [0] : vector<16x1xf32> to vector<1xf32>
    %221 = vector.shape_cast %220 : vector<1xf32> to vector<1x1xf32>
    %cst_87 = arith.constant dense<0x7F800000> : vector<16xf32>
    %222 = vector.multi_reduction <minimumf>, %217, %cst_87 [1] : vector<16x16xf32> to vector<16xf32>
    %223 = vector.shape_cast %222 : vector<16xf32> to vector<16x1xf32>
    %cst_88 = arith.constant dense<0x7F800000> : vector<1xf32>
    %224 = vector.multi_reduction <minimumf>, %223, %cst_88 [0] : vector<16x1xf32> to vector<1xf32>
    %225 = vector.shape_cast %224 : vector<1xf32> to vector<1x1xf32>
    %cst_89 = arith.constant dense<0.000000e+00> : vector<16xf32>
    %226 = vector.multi_reduction <add>, %217, %cst_89 [1] : vector<16x16xf32> to vector<16xf32>
    %227 = vector.shape_cast %226 : vector<16xf32> to vector<16x1xf32>
    %cst_90 = arith.constant dense<0.000000e+00> : vector<1xf32>
    %228 = vector.multi_reduction <add>, %227, %cst_90 [0] : vector<16x1xf32> to vector<1xf32>
    %229 = vector.shape_cast %228 : vector<1xf32> to vector<1x1xf32>
    %230 = arith.subf %221, %225 : vector<1x1xf32>
    %cst_91 = arith.constant 0.000000e+00 : f32
    %231 = vector.broadcast %cst_91 : f32 to vector<1x1xf32>
    %232 = arith.cmpf one, %230, %231 : vector<1x1xf32>
    %cst_92 = arith.constant 1.000000e+00 : f32
    %233 = vector.broadcast %cst_92 : f32 to vector<1x1xf32>
    %234 = arith.select %232, %230, %233 : vector<1x1xi1>, vector<1x1xf32>
    %235 = tpu.reciprocal %234 : vector<1x1xf32> -> vector<1x1xf32>
    %236 = vector.broadcast %225 : vector<1x1xf32> to vector<16x16xf32>
    %237 = arith.subf %217, %236 : vector<16x16xf32>
    %238 = vector.broadcast %235 : vector<1x1xf32> to vector<16x16xf32>
    %239 = arith.mulf %237, %238 : vector<16x16xf32>
    %240 = vector.shape_cast %232 : vector<1x1xi1> to vector<1x1xi1>
    %241 = vector.broadcast %240 : vector<1x1xi1> to vector<16x16xi1>
    %242 = arith.select %241, %239, %217 : vector<16x16xi1>, vector<16x16xf32>
    %cst_93 = arith.constant 2.560000e+02 : f32
    %243 = vector.broadcast %cst_93 : f32 to vector<1x1xf32>
    %244 = arith.mulf %243, %225 : vector<1x1xf32>
    %245 = arith.subf %229, %244 : vector<1x1xf32>
    %246 = arith.mulf %245, %235 : vector<1x1xf32>
    %247 = arith.select %232, %246, %229 : vector<1x1xi1>, vector<1x1xf32>
    %cst_94 = arith.constant 1.600000e+01 : f32
    %248 = vector.broadcast %cst_94 : f32 to vector<1x1xf32>
    %249 = arith.mulf %247, %248 : vector<1x1xf32>
    %250 = arith.addf %195, %249 : vector<1x1xf32>
    %c1_i32_95 = arith.constant 1 : i32
    %251 = tpu.dynamic_rotate %242 by %c1_i32_95 dim 0 : vector<16x16xf32>, i32 -> vector<16x16xf32>
    %cst_96 = arith.constant 0.000000e+00 : f32
    %252 = vector.broadcast %cst_96 : f32 to vector<16x16xf32>
    %253 = arith.select %6, %251, %252 : vector<16x16xi1>, vector<16x16xf32>
    %c15_i32_97 = arith.constant 15 : i32
    %254 = tpu.dynamic_rotate %242 by %c15_i32_97 dim 0 : vector<16x16xf32>, i32 -> vector<16x16xf32>
    %cst_98 = arith.constant 0.000000e+00 : f32
    %255 = vector.broadcast %cst_98 : f32 to vector<16x16xf32>
    %256 = arith.select %11, %254, %255 : vector<16x16xi1>, vector<16x16xf32>
    %c1_i32_99 = arith.constant 1 : i32
    %257 = tpu.dynamic_rotate %242 by %c1_i32_99 dim 1 : vector<16x16xf32>, i32 -> vector<16x16xf32>
    %cst_100 = arith.constant 0.000000e+00 : f32
    %258 = vector.broadcast %cst_100 : f32 to vector<16x16xf32>
    %259 = arith.select %16, %257, %258 : vector<16x16xi1>, vector<16x16xf32>
    %c15_i32_101 = arith.constant 15 : i32
    %260 = tpu.dynamic_rotate %242 by %c15_i32_101 dim 1 : vector<16x16xf32>, i32 -> vector<16x16xf32>
    %cst_102 = arith.constant 0.000000e+00 : f32
    %261 = vector.broadcast %cst_102 : f32 to vector<16x16xf32>
    %262 = arith.select %21, %260, %261 : vector<16x16xi1>, vector<16x16xf32>
    %263 = arith.addf %242, %253 : vector<16x16xf32>
    %264 = arith.addf %263, %256 : vector<16x16xf32>
    %265 = arith.addf %264, %259 : vector<16x16xf32>
    %266 = arith.addf %265, %262 : vector<16x16xf32>
    %cst_103 = arith.constant 2.000000e-01 : f32
    %267 = vector.broadcast %cst_103 : f32 to vector<16x16xf32>
    %268 = arith.mulf %267, %266 : vector<16x16xf32>
    %cst_104 = arith.constant 5.000000e-01 : f32
    %269 = vector.broadcast %cst_104 : f32 to vector<16x16xf32>
    %270 = arith.subf %268, %269 : vector<16x16xf32>
    %cst_105 = arith.constant 0.000000e+00 : f32
    %271 = vector.broadcast %cst_105 : f32 to vector<16x16xf32>
    %272 = arith.maximumf %270, %271 : vector<16x16xf32>
    %cst_106 = arith.constant dense<0xFF800000> : vector<16xf32>
    %273 = vector.multi_reduction <maximumf>, %272, %cst_106 [1] : vector<16x16xf32> to vector<16xf32>
    %274 = vector.shape_cast %273 : vector<16xf32> to vector<16x1xf32>
    %cst_107 = arith.constant dense<0xFF800000> : vector<1xf32>
    %275 = vector.multi_reduction <maximumf>, %274, %cst_107 [0] : vector<16x1xf32> to vector<1xf32>
    %276 = vector.shape_cast %275 : vector<1xf32> to vector<1x1xf32>
    %cst_108 = arith.constant dense<0x7F800000> : vector<16xf32>
    %277 = vector.multi_reduction <minimumf>, %272, %cst_108 [1] : vector<16x16xf32> to vector<16xf32>
    %278 = vector.shape_cast %277 : vector<16xf32> to vector<16x1xf32>
    %cst_109 = arith.constant dense<0x7F800000> : vector<1xf32>
    %279 = vector.multi_reduction <minimumf>, %278, %cst_109 [0] : vector<16x1xf32> to vector<1xf32>
    %280 = vector.shape_cast %279 : vector<1xf32> to vector<1x1xf32>
    %cst_110 = arith.constant dense<0.000000e+00> : vector<16xf32>
    %281 = vector.multi_reduction <add>, %272, %cst_110 [1] : vector<16x16xf32> to vector<16xf32>
    %282 = vector.shape_cast %281 : vector<16xf32> to vector<16x1xf32>
    %cst_111 = arith.constant dense<0.000000e+00> : vector<1xf32>
    %283 = vector.multi_reduction <add>, %282, %cst_111 [0] : vector<16x1xf32> to vector<1xf32>
    %284 = vector.shape_cast %283 : vector<1xf32> to vector<1x1xf32>
    %285 = arith.subf %276, %280 : vector<1x1xf32>
    %cst_112 = arith.constant 0.000000e+00 : f32
    %286 = vector.broadcast %cst_112 : f32 to vector<1x1xf32>
    %287 = arith.cmpf one, %285, %286 : vector<1x1xf32>
    %cst_113 = arith.constant 1.000000e+00 : f32
    %288 = vector.broadcast %cst_113 : f32 to vector<1x1xf32>
    %289 = arith.select %287, %285, %288 : vector<1x1xi1>, vector<1x1xf32>
    %290 = tpu.reciprocal %289 : vector<1x1xf32> -> vector<1x1xf32>
    %291 = vector.broadcast %280 : vector<1x1xf32> to vector<16x16xf32>
    %292 = arith.subf %272, %291 : vector<16x16xf32>
    %293 = vector.broadcast %290 : vector<1x1xf32> to vector<16x16xf32>
    %294 = arith.mulf %292, %293 : vector<16x16xf32>
    %295 = vector.shape_cast %287 : vector<1x1xi1> to vector<1x1xi1>
    %296 = vector.broadcast %295 : vector<1x1xi1> to vector<16x16xi1>
    %297 = arith.select %296, %294, %272 : vector<16x16xi1>, vector<16x16xf32>
    %cst_114 = arith.constant 2.560000e+02 : f32
    %298 = vector.broadcast %cst_114 : f32 to vector<1x1xf32>
    %299 = arith.mulf %298, %280 : vector<1x1xf32>
    %300 = arith.subf %284, %299 : vector<1x1xf32>
    %301 = arith.mulf %300, %290 : vector<1x1xf32>
    %302 = arith.select %287, %301, %284 : vector<1x1xi1>, vector<1x1xf32>
    %cst_115 = arith.constant 2.500000e+01 : f32
    %303 = vector.broadcast %cst_115 : f32 to vector<1x1xf32>
    %304 = arith.mulf %302, %303 : vector<1x1xf32>
    %305 = arith.addf %250, %304 : vector<1x1xf32>
    %c1_i32_116 = arith.constant 1 : i32
    %306 = tpu.dynamic_rotate %297 by %c1_i32_116 dim 0 : vector<16x16xf32>, i32 -> vector<16x16xf32>
    %cst_117 = arith.constant 0.000000e+00 : f32
    %307 = vector.broadcast %cst_117 : f32 to vector<16x16xf32>
    %308 = arith.select %6, %306, %307 : vector<16x16xi1>, vector<16x16xf32>
    %c15_i32_118 = arith.constant 15 : i32
    %309 = tpu.dynamic_rotate %297 by %c15_i32_118 dim 0 : vector<16x16xf32>, i32 -> vector<16x16xf32>
    %cst_119 = arith.constant 0.000000e+00 : f32
    %310 = vector.broadcast %cst_119 : f32 to vector<16x16xf32>
    %311 = arith.select %11, %309, %310 : vector<16x16xi1>, vector<16x16xf32>
    %c1_i32_120 = arith.constant 1 : i32
    %312 = tpu.dynamic_rotate %297 by %c1_i32_120 dim 1 : vector<16x16xf32>, i32 -> vector<16x16xf32>
    %cst_121 = arith.constant 0.000000e+00 : f32
    %313 = vector.broadcast %cst_121 : f32 to vector<16x16xf32>
    %314 = arith.select %16, %312, %313 : vector<16x16xi1>, vector<16x16xf32>
    %c15_i32_122 = arith.constant 15 : i32
    %315 = tpu.dynamic_rotate %297 by %c15_i32_122 dim 1 : vector<16x16xf32>, i32 -> vector<16x16xf32>
    %cst_123 = arith.constant 0.000000e+00 : f32
    %316 = vector.broadcast %cst_123 : f32 to vector<16x16xf32>
    %317 = arith.select %21, %315, %316 : vector<16x16xi1>, vector<16x16xf32>
    %318 = arith.addf %297, %308 : vector<16x16xf32>
    %319 = arith.addf %318, %311 : vector<16x16xf32>
    %320 = arith.addf %319, %314 : vector<16x16xf32>
    %321 = arith.addf %320, %317 : vector<16x16xf32>
    %cst_124 = arith.constant 2.000000e-01 : f32
    %322 = vector.broadcast %cst_124 : f32 to vector<16x16xf32>
    %323 = arith.mulf %322, %321 : vector<16x16xf32>
    %cst_125 = arith.constant 5.000000e-01 : f32
    %324 = vector.broadcast %cst_125 : f32 to vector<16x16xf32>
    %325 = arith.subf %323, %324 : vector<16x16xf32>
    %cst_126 = arith.constant 0.000000e+00 : f32
    %326 = vector.broadcast %cst_126 : f32 to vector<16x16xf32>
    %327 = arith.maximumf %325, %326 : vector<16x16xf32>
    %cst_127 = arith.constant dense<0xFF800000> : vector<16xf32>
    %328 = vector.multi_reduction <maximumf>, %327, %cst_127 [1] : vector<16x16xf32> to vector<16xf32>
    %329 = vector.shape_cast %328 : vector<16xf32> to vector<16x1xf32>
    %cst_128 = arith.constant dense<0xFF800000> : vector<1xf32>
    %330 = vector.multi_reduction <maximumf>, %329, %cst_128 [0] : vector<16x1xf32> to vector<1xf32>
    %331 = vector.shape_cast %330 : vector<1xf32> to vector<1x1xf32>
    %cst_129 = arith.constant dense<0x7F800000> : vector<16xf32>
    %332 = vector.multi_reduction <minimumf>, %327, %cst_129 [1] : vector<16x16xf32> to vector<16xf32>
    %333 = vector.shape_cast %332 : vector<16xf32> to vector<16x1xf32>
    %cst_130 = arith.constant dense<0x7F800000> : vector<1xf32>
    %334 = vector.multi_reduction <minimumf>, %333, %cst_130 [0] : vector<16x1xf32> to vector<1xf32>
    %335 = vector.shape_cast %334 : vector<1xf32> to vector<1x1xf32>
    %cst_131 = arith.constant dense<0.000000e+00> : vector<16xf32>
    %336 = vector.multi_reduction <add>, %327, %cst_131 [1] : vector<16x16xf32> to vector<16xf32>
    %337 = vector.shape_cast %336 : vector<16xf32> to vector<16x1xf32>
    %cst_132 = arith.constant dense<0.000000e+00> : vector<1xf32>
    %338 = vector.multi_reduction <add>, %337, %cst_132 [0] : vector<16x1xf32> to vector<1xf32>
    %339 = vector.shape_cast %338 : vector<1xf32> to vector<1x1xf32>
    %340 = arith.subf %331, %335 : vector<1x1xf32>
    %cst_133 = arith.constant 0.000000e+00 : f32
    %341 = vector.broadcast %cst_133 : f32 to vector<1x1xf32>
    %342 = arith.cmpf one, %340, %341 : vector<1x1xf32>
    %cst_134 = arith.constant 1.000000e+00 : f32
    %343 = vector.broadcast %cst_134 : f32 to vector<1x1xf32>
    %344 = arith.select %342, %340, %343 : vector<1x1xi1>, vector<1x1xf32>
    %345 = tpu.reciprocal %344 : vector<1x1xf32> -> vector<1x1xf32>
    %346 = vector.broadcast %335 : vector<1x1xf32> to vector<16x16xf32>
    %347 = arith.subf %327, %346 : vector<16x16xf32>
    %348 = vector.broadcast %345 : vector<1x1xf32> to vector<16x16xf32>
    %349 = arith.mulf %347, %348 : vector<16x16xf32>
    %350 = vector.shape_cast %342 : vector<1x1xi1> to vector<1x1xi1>
    %351 = vector.broadcast %350 : vector<1x1xi1> to vector<16x16xi1>
    %352 = arith.select %351, %349, %327 : vector<16x16xi1>, vector<16x16xf32>
    %cst_135 = arith.constant 2.560000e+02 : f32
    %353 = vector.broadcast %cst_135 : f32 to vector<1x1xf32>
    %354 = arith.mulf %353, %335 : vector<1x1xf32>
    %355 = arith.subf %339, %354 : vector<1x1xf32>
    %356 = arith.mulf %355, %345 : vector<1x1xf32>
    %357 = arith.select %342, %356, %339 : vector<1x1xi1>, vector<1x1xf32>
    %cst_136 = arith.constant 3.600000e+01 : f32
    %358 = vector.broadcast %cst_136 : f32 to vector<1x1xf32>
    %359 = arith.mulf %357, %358 : vector<1x1xf32>
    %360 = arith.addf %305, %359 : vector<1x1xf32>
    %c1_i32_137 = arith.constant 1 : i32
    %361 = tpu.dynamic_rotate %352 by %c1_i32_137 dim 0 : vector<16x16xf32>, i32 -> vector<16x16xf32>
    %cst_138 = arith.constant 0.000000e+00 : f32
    %362 = vector.broadcast %cst_138 : f32 to vector<16x16xf32>
    %363 = arith.select %6, %361, %362 : vector<16x16xi1>, vector<16x16xf32>
    %c15_i32_139 = arith.constant 15 : i32
    %364 = tpu.dynamic_rotate %352 by %c15_i32_139 dim 0 : vector<16x16xf32>, i32 -> vector<16x16xf32>
    %cst_140 = arith.constant 0.000000e+00 : f32
    %365 = vector.broadcast %cst_140 : f32 to vector<16x16xf32>
    %366 = arith.select %11, %364, %365 : vector<16x16xi1>, vector<16x16xf32>
    %c1_i32_141 = arith.constant 1 : i32
    %367 = tpu.dynamic_rotate %352 by %c1_i32_141 dim 1 : vector<16x16xf32>, i32 -> vector<16x16xf32>
    %cst_142 = arith.constant 0.000000e+00 : f32
    %368 = vector.broadcast %cst_142 : f32 to vector<16x16xf32>
    %369 = arith.select %16, %367, %368 : vector<16x16xi1>, vector<16x16xf32>
    %c15_i32_143 = arith.constant 15 : i32
    %370 = tpu.dynamic_rotate %352 by %c15_i32_143 dim 1 : vector<16x16xf32>, i32 -> vector<16x16xf32>
    %cst_144 = arith.constant 0.000000e+00 : f32
    %371 = vector.broadcast %cst_144 : f32 to vector<16x16xf32>
    %372 = arith.select %21, %370, %371 : vector<16x16xi1>, vector<16x16xf32>
    %373 = arith.addf %352, %363 : vector<16x16xf32>
    %374 = arith.addf %373, %366 : vector<16x16xf32>
    %375 = arith.addf %374, %369 : vector<16x16xf32>
    %376 = arith.addf %375, %372 : vector<16x16xf32>
    %cst_145 = arith.constant 2.000000e-01 : f32
    %377 = vector.broadcast %cst_145 : f32 to vector<16x16xf32>
    %378 = arith.mulf %377, %376 : vector<16x16xf32>
    %cst_146 = arith.constant 5.000000e-01 : f32
    %379 = vector.broadcast %cst_146 : f32 to vector<16x16xf32>
    %380 = arith.subf %378, %379 : vector<16x16xf32>
    %cst_147 = arith.constant 0.000000e+00 : f32
    %381 = vector.broadcast %cst_147 : f32 to vector<16x16xf32>
    %382 = arith.maximumf %380, %381 : vector<16x16xf32>
    %cst_148 = arith.constant dense<0xFF800000> : vector<16xf32>
    %383 = vector.multi_reduction <maximumf>, %382, %cst_148 [1] : vector<16x16xf32> to vector<16xf32>
    %384 = vector.shape_cast %383 : vector<16xf32> to vector<16x1xf32>
    %cst_149 = arith.constant dense<0xFF800000> : vector<1xf32>
    %385 = vector.multi_reduction <maximumf>, %384, %cst_149 [0] : vector<16x1xf32> to vector<1xf32>
    %386 = vector.shape_cast %385 : vector<1xf32> to vector<1x1xf32>
    %cst_150 = arith.constant dense<0x7F800000> : vector<16xf32>
    %387 = vector.multi_reduction <minimumf>, %382, %cst_150 [1] : vector<16x16xf32> to vector<16xf32>
    %388 = vector.shape_cast %387 : vector<16xf32> to vector<16x1xf32>
    %cst_151 = arith.constant dense<0x7F800000> : vector<1xf32>
    %389 = vector.multi_reduction <minimumf>, %388, %cst_151 [0] : vector<16x1xf32> to vector<1xf32>
    %390 = vector.shape_cast %389 : vector<1xf32> to vector<1x1xf32>
    %cst_152 = arith.constant dense<0.000000e+00> : vector<16xf32>
    %391 = vector.multi_reduction <add>, %382, %cst_152 [1] : vector<16x16xf32> to vector<16xf32>
    %392 = vector.shape_cast %391 : vector<16xf32> to vector<16x1xf32>
    %cst_153 = arith.constant dense<0.000000e+00> : vector<1xf32>
    %393 = vector.multi_reduction <add>, %392, %cst_153 [0] : vector<16x1xf32> to vector<1xf32>
    %394 = vector.shape_cast %393 : vector<1xf32> to vector<1x1xf32>
    %395 = arith.subf %386, %390 : vector<1x1xf32>
    %cst_154 = arith.constant 0.000000e+00 : f32
    %396 = vector.broadcast %cst_154 : f32 to vector<1x1xf32>
    %397 = arith.cmpf one, %395, %396 : vector<1x1xf32>
    %cst_155 = arith.constant 1.000000e+00 : f32
    %398 = vector.broadcast %cst_155 : f32 to vector<1x1xf32>
    %399 = arith.select %397, %395, %398 : vector<1x1xi1>, vector<1x1xf32>
    %400 = tpu.reciprocal %399 : vector<1x1xf32> -> vector<1x1xf32>
    %401 = vector.broadcast %390 : vector<1x1xf32> to vector<16x16xf32>
    %402 = arith.subf %382, %401 : vector<16x16xf32>
    %403 = vector.broadcast %400 : vector<1x1xf32> to vector<16x16xf32>
    %404 = arith.mulf %402, %403 : vector<16x16xf32>
    %405 = vector.shape_cast %397 : vector<1x1xi1> to vector<1x1xi1>
    %406 = vector.broadcast %405 : vector<1x1xi1> to vector<16x16xi1>
    %407 = arith.select %406, %404, %382 : vector<16x16xi1>, vector<16x16xf32>
    %cst_156 = arith.constant 2.560000e+02 : f32
    %408 = vector.broadcast %cst_156 : f32 to vector<1x1xf32>
    %409 = arith.mulf %408, %390 : vector<1x1xf32>
    %410 = arith.subf %394, %409 : vector<1x1xf32>
    %411 = arith.mulf %410, %400 : vector<1x1xf32>
    %412 = arith.select %397, %411, %394 : vector<1x1xi1>, vector<1x1xf32>
    %cst_157 = arith.constant 4.900000e+01 : f32
    %413 = vector.broadcast %cst_157 : f32 to vector<1x1xf32>
    %414 = arith.mulf %412, %413 : vector<1x1xf32>
    %415 = arith.addf %360, %414 : vector<1x1xf32>
    %c1_i32_158 = arith.constant 1 : i32
    %416 = tpu.dynamic_rotate %407 by %c1_i32_158 dim 0 : vector<16x16xf32>, i32 -> vector<16x16xf32>
    %cst_159 = arith.constant 0.000000e+00 : f32
    %417 = vector.broadcast %cst_159 : f32 to vector<16x16xf32>
    %418 = arith.select %6, %416, %417 : vector<16x16xi1>, vector<16x16xf32>
    %c15_i32_160 = arith.constant 15 : i32
    %419 = tpu.dynamic_rotate %407 by %c15_i32_160 dim 0 : vector<16x16xf32>, i32 -> vector<16x16xf32>
    %cst_161 = arith.constant 0.000000e+00 : f32
    %420 = vector.broadcast %cst_161 : f32 to vector<16x16xf32>
    %421 = arith.select %11, %419, %420 : vector<16x16xi1>, vector<16x16xf32>
    %c1_i32_162 = arith.constant 1 : i32
    %422 = tpu.dynamic_rotate %407 by %c1_i32_162 dim 1 : vector<16x16xf32>, i32 -> vector<16x16xf32>
    %cst_163 = arith.constant 0.000000e+00 : f32
    %423 = vector.broadcast %cst_163 : f32 to vector<16x16xf32>
    %424 = arith.select %16, %422, %423 : vector<16x16xi1>, vector<16x16xf32>
    %c15_i32_164 = arith.constant 15 : i32
    %425 = tpu.dynamic_rotate %407 by %c15_i32_164 dim 1 : vector<16x16xf32>, i32 -> vector<16x16xf32>
    %cst_165 = arith.constant 0.000000e+00 : f32
    %426 = vector.broadcast %cst_165 : f32 to vector<16x16xf32>
    %427 = arith.select %21, %425, %426 : vector<16x16xi1>, vector<16x16xf32>
    %428 = arith.addf %407, %418 : vector<16x16xf32>
    %429 = arith.addf %428, %421 : vector<16x16xf32>
    %430 = arith.addf %429, %424 : vector<16x16xf32>
    %431 = arith.addf %430, %427 : vector<16x16xf32>
    %cst_166 = arith.constant 2.000000e-01 : f32
    %432 = vector.broadcast %cst_166 : f32 to vector<16x16xf32>
    %433 = arith.mulf %432, %431 : vector<16x16xf32>
    %cst_167 = arith.constant 5.000000e-01 : f32
    %434 = vector.broadcast %cst_167 : f32 to vector<16x16xf32>
    %435 = arith.subf %433, %434 : vector<16x16xf32>
    %cst_168 = arith.constant 0.000000e+00 : f32
    %436 = vector.broadcast %cst_168 : f32 to vector<16x16xf32>
    %437 = arith.maximumf %435, %436 : vector<16x16xf32>
    %cst_169 = arith.constant dense<0xFF800000> : vector<16xf32>
    %438 = vector.multi_reduction <maximumf>, %437, %cst_169 [1] : vector<16x16xf32> to vector<16xf32>
    %439 = vector.shape_cast %438 : vector<16xf32> to vector<16x1xf32>
    %cst_170 = arith.constant dense<0xFF800000> : vector<1xf32>
    %440 = vector.multi_reduction <maximumf>, %439, %cst_170 [0] : vector<16x1xf32> to vector<1xf32>
    %441 = vector.shape_cast %440 : vector<1xf32> to vector<1x1xf32>
    %cst_171 = arith.constant dense<0x7F800000> : vector<16xf32>
    %442 = vector.multi_reduction <minimumf>, %437, %cst_171 [1] : vector<16x16xf32> to vector<16xf32>
    %443 = vector.shape_cast %442 : vector<16xf32> to vector<16x1xf32>
    %cst_172 = arith.constant dense<0x7F800000> : vector<1xf32>
    %444 = vector.multi_reduction <minimumf>, %443, %cst_172 [0] : vector<16x1xf32> to vector<1xf32>
    %445 = vector.shape_cast %444 : vector<1xf32> to vector<1x1xf32>
    %cst_173 = arith.constant dense<0.000000e+00> : vector<16xf32>
    %446 = vector.multi_reduction <add>, %437, %cst_173 [1] : vector<16x16xf32> to vector<16xf32>
    %447 = vector.shape_cast %446 : vector<16xf32> to vector<16x1xf32>
    %cst_174 = arith.constant dense<0.000000e+00> : vector<1xf32>
    %448 = vector.multi_reduction <add>, %447, %cst_174 [0] : vector<16x1xf32> to vector<1xf32>
    %449 = vector.shape_cast %448 : vector<1xf32> to vector<1x1xf32>
    %450 = arith.subf %441, %445 : vector<1x1xf32>
    %cst_175 = arith.constant 0.000000e+00 : f32
    %451 = vector.broadcast %cst_175 : f32 to vector<1x1xf32>
    %452 = arith.cmpf one, %450, %451 : vector<1x1xf32>
    %cst_176 = arith.constant 1.000000e+00 : f32
    %453 = vector.broadcast %cst_176 : f32 to vector<1x1xf32>
    %454 = arith.select %452, %450, %453 : vector<1x1xi1>, vector<1x1xf32>
    %455 = tpu.reciprocal %454 : vector<1x1xf32> -> vector<1x1xf32>
    %456 = vector.broadcast %445 : vector<1x1xf32> to vector<16x16xf32>
    %457 = arith.subf %437, %456 : vector<16x16xf32>
    %458 = vector.broadcast %455 : vector<1x1xf32> to vector<16x16xf32>
    %459 = arith.mulf %457, %458 : vector<16x16xf32>
    %460 = vector.shape_cast %452 : vector<1x1xi1> to vector<1x1xi1>
    %461 = vector.broadcast %460 : vector<1x1xi1> to vector<16x16xi1>
    %462 = arith.select %461, %459, %437 : vector<16x16xi1>, vector<16x16xf32>
    %cst_177 = arith.constant 2.560000e+02 : f32
    %463 = vector.broadcast %cst_177 : f32 to vector<1x1xf32>
    %464 = arith.mulf %463, %445 : vector<1x1xf32>
    %465 = arith.subf %449, %464 : vector<1x1xf32>
    %466 = arith.mulf %465, %455 : vector<1x1xf32>
    %467 = arith.select %452, %466, %449 : vector<1x1xi1>, vector<1x1xf32>
    %cst_178 = arith.constant 6.400000e+01 : f32
    %468 = vector.broadcast %cst_178 : f32 to vector<1x1xf32>
    %469 = arith.mulf %467, %468 : vector<1x1xf32>
    %470 = arith.addf %415, %469 : vector<1x1xf32>
    %c1_i32_179 = arith.constant 1 : i32
    %471 = tpu.dynamic_rotate %462 by %c1_i32_179 dim 0 : vector<16x16xf32>, i32 -> vector<16x16xf32>
    %cst_180 = arith.constant 0.000000e+00 : f32
    %472 = vector.broadcast %cst_180 : f32 to vector<16x16xf32>
    %473 = arith.select %6, %471, %472 : vector<16x16xi1>, vector<16x16xf32>
    %c15_i32_181 = arith.constant 15 : i32
    %474 = tpu.dynamic_rotate %462 by %c15_i32_181 dim 0 : vector<16x16xf32>, i32 -> vector<16x16xf32>
    %cst_182 = arith.constant 0.000000e+00 : f32
    %475 = vector.broadcast %cst_182 : f32 to vector<16x16xf32>
    %476 = arith.select %11, %474, %475 : vector<16x16xi1>, vector<16x16xf32>
    %c1_i32_183 = arith.constant 1 : i32
    %477 = tpu.dynamic_rotate %462 by %c1_i32_183 dim 1 : vector<16x16xf32>, i32 -> vector<16x16xf32>
    %cst_184 = arith.constant 0.000000e+00 : f32
    %478 = vector.broadcast %cst_184 : f32 to vector<16x16xf32>
    %479 = arith.select %16, %477, %478 : vector<16x16xi1>, vector<16x16xf32>
    %c15_i32_185 = arith.constant 15 : i32
    %480 = tpu.dynamic_rotate %462 by %c15_i32_185 dim 1 : vector<16x16xf32>, i32 -> vector<16x16xf32>
    %cst_186 = arith.constant 0.000000e+00 : f32
    %481 = vector.broadcast %cst_186 : f32 to vector<16x16xf32>
    %482 = arith.select %21, %480, %481 : vector<16x16xi1>, vector<16x16xf32>
    %483 = arith.addf %462, %473 : vector<16x16xf32>
    %484 = arith.addf %483, %476 : vector<16x16xf32>
    %485 = arith.addf %484, %479 : vector<16x16xf32>
    %486 = arith.addf %485, %482 : vector<16x16xf32>
    %cst_187 = arith.constant 2.000000e-01 : f32
    %487 = vector.broadcast %cst_187 : f32 to vector<16x16xf32>
    %488 = arith.mulf %487, %486 : vector<16x16xf32>
    %cst_188 = arith.constant 5.000000e-01 : f32
    %489 = vector.broadcast %cst_188 : f32 to vector<16x16xf32>
    %490 = arith.subf %488, %489 : vector<16x16xf32>
    %cst_189 = arith.constant 0.000000e+00 : f32
    %491 = vector.broadcast %cst_189 : f32 to vector<16x16xf32>
    %492 = arith.maximumf %490, %491 : vector<16x16xf32>
    %cst_190 = arith.constant dense<0xFF800000> : vector<16xf32>
    %493 = vector.multi_reduction <maximumf>, %492, %cst_190 [1] : vector<16x16xf32> to vector<16xf32>
    %494 = vector.shape_cast %493 : vector<16xf32> to vector<16x1xf32>
    %cst_191 = arith.constant dense<0xFF800000> : vector<1xf32>
    %495 = vector.multi_reduction <maximumf>, %494, %cst_191 [0] : vector<16x1xf32> to vector<1xf32>
    %496 = vector.shape_cast %495 : vector<1xf32> to vector<1x1xf32>
    %cst_192 = arith.constant dense<0x7F800000> : vector<16xf32>
    %497 = vector.multi_reduction <minimumf>, %492, %cst_192 [1] : vector<16x16xf32> to vector<16xf32>
    %498 = vector.shape_cast %497 : vector<16xf32> to vector<16x1xf32>
    %cst_193 = arith.constant dense<0x7F800000> : vector<1xf32>
    %499 = vector.multi_reduction <minimumf>, %498, %cst_193 [0] : vector<16x1xf32> to vector<1xf32>
    %500 = vector.shape_cast %499 : vector<1xf32> to vector<1x1xf32>
    %cst_194 = arith.constant dense<0.000000e+00> : vector<16xf32>
    %501 = vector.multi_reduction <add>, %492, %cst_194 [1] : vector<16x16xf32> to vector<16xf32>
    %502 = vector.shape_cast %501 : vector<16xf32> to vector<16x1xf32>
    %cst_195 = arith.constant dense<0.000000e+00> : vector<1xf32>
    %503 = vector.multi_reduction <add>, %502, %cst_195 [0] : vector<16x1xf32> to vector<1xf32>
    %504 = vector.shape_cast %503 : vector<1xf32> to vector<1x1xf32>
    %505 = arith.subf %496, %500 : vector<1x1xf32>
    %cst_196 = arith.constant 0.000000e+00 : f32
    %506 = vector.broadcast %cst_196 : f32 to vector<1x1xf32>
    %507 = arith.cmpf one, %505, %506 : vector<1x1xf32>
    %cst_197 = arith.constant 1.000000e+00 : f32
    %508 = vector.broadcast %cst_197 : f32 to vector<1x1xf32>
    %509 = arith.select %507, %505, %508 : vector<1x1xi1>, vector<1x1xf32>
    %510 = tpu.reciprocal %509 : vector<1x1xf32> -> vector<1x1xf32>
    %511 = vector.broadcast %500 : vector<1x1xf32> to vector<16x16xf32>
    %512 = arith.subf %492, %511 : vector<16x16xf32>
    %513 = vector.broadcast %510 : vector<1x1xf32> to vector<16x16xf32>
    %514 = arith.mulf %512, %513 : vector<16x16xf32>
    %515 = vector.shape_cast %507 : vector<1x1xi1> to vector<1x1xi1>
    %516 = vector.broadcast %515 : vector<1x1xi1> to vector<16x16xi1>
    %517 = arith.select %516, %514, %492 : vector<16x16xi1>, vector<16x16xf32>
    %cst_198 = arith.constant 2.560000e+02 : f32
    %518 = vector.broadcast %cst_198 : f32 to vector<1x1xf32>
    %519 = arith.mulf %518, %500 : vector<1x1xf32>
    %520 = arith.subf %504, %519 : vector<1x1xf32>
    %521 = arith.mulf %520, %510 : vector<1x1xf32>
    %522 = arith.select %507, %521, %504 : vector<1x1xi1>, vector<1x1xf32>
    %cst_199 = arith.constant 8.100000e+01 : f32
    %523 = vector.broadcast %cst_199 : f32 to vector<1x1xf32>
    %524 = arith.mulf %522, %523 : vector<1x1xf32>
    %525 = arith.addf %470, %524 : vector<1x1xf32>
    %c1_i32_200 = arith.constant 1 : i32
    %526 = tpu.dynamic_rotate %517 by %c1_i32_200 dim 0 : vector<16x16xf32>, i32 -> vector<16x16xf32>
    %cst_201 = arith.constant 0.000000e+00 : f32
    %527 = vector.broadcast %cst_201 : f32 to vector<16x16xf32>
    %528 = arith.select %6, %526, %527 : vector<16x16xi1>, vector<16x16xf32>
    %c15_i32_202 = arith.constant 15 : i32
    %529 = tpu.dynamic_rotate %517 by %c15_i32_202 dim 0 : vector<16x16xf32>, i32 -> vector<16x16xf32>
    %cst_203 = arith.constant 0.000000e+00 : f32
    %530 = vector.broadcast %cst_203 : f32 to vector<16x16xf32>
    %531 = arith.select %11, %529, %530 : vector<16x16xi1>, vector<16x16xf32>
    %c1_i32_204 = arith.constant 1 : i32
    %532 = tpu.dynamic_rotate %517 by %c1_i32_204 dim 1 : vector<16x16xf32>, i32 -> vector<16x16xf32>
    %cst_205 = arith.constant 0.000000e+00 : f32
    %533 = vector.broadcast %cst_205 : f32 to vector<16x16xf32>
    %534 = arith.select %16, %532, %533 : vector<16x16xi1>, vector<16x16xf32>
    %c15_i32_206 = arith.constant 15 : i32
    %535 = tpu.dynamic_rotate %517 by %c15_i32_206 dim 1 : vector<16x16xf32>, i32 -> vector<16x16xf32>
    %cst_207 = arith.constant 0.000000e+00 : f32
    %536 = vector.broadcast %cst_207 : f32 to vector<16x16xf32>
    %537 = arith.select %21, %535, %536 : vector<16x16xi1>, vector<16x16xf32>
    %538 = arith.addf %517, %528 : vector<16x16xf32>
    %539 = arith.addf %538, %531 : vector<16x16xf32>
    %540 = arith.addf %539, %534 : vector<16x16xf32>
    %541 = arith.addf %540, %537 : vector<16x16xf32>
    %cst_208 = arith.constant 2.000000e-01 : f32
    %542 = vector.broadcast %cst_208 : f32 to vector<16x16xf32>
    %543 = arith.mulf %542, %541 : vector<16x16xf32>
    %cst_209 = arith.constant 5.000000e-01 : f32
    %544 = vector.broadcast %cst_209 : f32 to vector<16x16xf32>
    %545 = arith.subf %543, %544 : vector<16x16xf32>
    %cst_210 = arith.constant 0.000000e+00 : f32
    %546 = vector.broadcast %cst_210 : f32 to vector<16x16xf32>
    %547 = arith.maximumf %545, %546 : vector<16x16xf32>
    %cst_211 = arith.constant dense<0xFF800000> : vector<16xf32>
    %548 = vector.multi_reduction <maximumf>, %547, %cst_211 [1] : vector<16x16xf32> to vector<16xf32>
    %549 = vector.shape_cast %548 : vector<16xf32> to vector<16x1xf32>
    %cst_212 = arith.constant dense<0xFF800000> : vector<1xf32>
    %550 = vector.multi_reduction <maximumf>, %549, %cst_212 [0] : vector<16x1xf32> to vector<1xf32>
    %551 = vector.shape_cast %550 : vector<1xf32> to vector<1x1xf32>
    %cst_213 = arith.constant dense<0x7F800000> : vector<16xf32>
    %552 = vector.multi_reduction <minimumf>, %547, %cst_213 [1] : vector<16x16xf32> to vector<16xf32>
    %553 = vector.shape_cast %552 : vector<16xf32> to vector<16x1xf32>
    %cst_214 = arith.constant dense<0x7F800000> : vector<1xf32>
    %554 = vector.multi_reduction <minimumf>, %553, %cst_214 [0] : vector<16x1xf32> to vector<1xf32>
    %555 = vector.shape_cast %554 : vector<1xf32> to vector<1x1xf32>
    %cst_215 = arith.constant dense<0.000000e+00> : vector<16xf32>
    %556 = vector.multi_reduction <add>, %547, %cst_215 [1] : vector<16x16xf32> to vector<16xf32>
    %557 = vector.shape_cast %556 : vector<16xf32> to vector<16x1xf32>
    %cst_216 = arith.constant dense<0.000000e+00> : vector<1xf32>
    %558 = vector.multi_reduction <add>, %557, %cst_216 [0] : vector<16x1xf32> to vector<1xf32>
    %559 = vector.shape_cast %558 : vector<1xf32> to vector<1x1xf32>
    %560 = arith.subf %551, %555 : vector<1x1xf32>
    %cst_217 = arith.constant 0.000000e+00 : f32
    %561 = vector.broadcast %cst_217 : f32 to vector<1x1xf32>
    %562 = arith.cmpf one, %560, %561 : vector<1x1xf32>
    %cst_218 = arith.constant 1.000000e+00 : f32
    %563 = vector.broadcast %cst_218 : f32 to vector<1x1xf32>
    %564 = arith.select %562, %560, %563 : vector<1x1xi1>, vector<1x1xf32>
    %565 = tpu.reciprocal %564 : vector<1x1xf32> -> vector<1x1xf32>
    %cst_219 = arith.constant 2.560000e+02 : f32
    %566 = vector.broadcast %cst_219 : f32 to vector<1x1xf32>
    %567 = arith.mulf %566, %555 : vector<1x1xf32>
    %568 = arith.subf %559, %567 : vector<1x1xf32>
    %569 = arith.mulf %568, %565 : vector<1x1xf32>
    %570 = arith.select %562, %569, %559 : vector<1x1xi1>, vector<1x1xf32>
    %cst_220 = arith.constant 1.000000e+02 : f32
    %571 = vector.broadcast %cst_220 : f32 to vector<1x1xf32>
    %572 = arith.mulf %570, %571 : vector<1x1xf32>
    %573 = arith.addf %525, %572 : vector<1x1xf32>
    %574 = vector.shape_cast %573 : vector<1x1xf32> to vector<1x1xf32>
    %575 = vector.broadcast %574 : vector<1x1xf32> to vector<1x128xf32>
    %c0_221 = arith.constant 0 : index
    %c0_222 = arith.constant 0 : index
    %c0_223 = arith.constant 0 : index
    %576 = vector.load %arg3[%c0_221, %c0_222, %c0_223] : memref<1x1x128xf32, #tpu.memory_space<vmem>>, vector<1x1x128xf32>
    %577 = vector.shape_cast %576 : vector<1x1x128xf32> to vector<1x128xf32>
    %578 = vector.shape_cast %575 : vector<1x128xf32> to vector<1x1x128xf32>
    tpu.vector_store %arg3[%c0_221, %c0_222, %c0_223], %578 {strides = array<i32>} : memref<1x1x128xf32, #tpu.memory_space<vmem>>, vector<1x1x128xf32>,
    return
  }
  func.func @transform_0(%arg0: i32) -> (i32, i32, i32) {
    %c0_i32 = arith.constant 0 : i32
    %c0_i32_0 = arith.constant 0 : i32
    %c0_i32_1 = arith.constant 0 : i32
    return %arg0, %c0_i32, %c0_i32_0 : i32, i32, i32
  }
  func.func @transform_1(%arg0: i32) -> (i32, i32, i32) {
    %c0_i32 = arith.constant 0 : i32
    %c0_i32_0 = arith.constant 0 : i32
    %c0_i32_1 = arith.constant 0 : i32
    return %arg0, %c0_i32, %c0_i32_0 : i32, i32, i32
  }
  func.func @transform_2(%arg0: i32) -> (i32, i32, i32) {
    %c0_i32 = arith.constant 0 : i32
    %c0_i32_0 = arith.constant 0 : i32
    %c0_i32_1 = arith.constant 0 : i32
    return %arg0, %c0_i32, %c0_i32_0 : i32, i32, i32
  }
}

</mosaic_0001>

<bundles_post_ra>
// kernel: tpu_custom_call.1
= control target key start
LH: loop header
LB: loop body
LE: loop exit
PB: predicated region body
PF: predicated region fallthrough
CT: control target
= control target key end

     0   :  { %7 = vsyncpa [#allocation3], 0  ;;  %s2835_s0 = inlined_call_operand.hbm [shape: bf16[2,16,16], index: 0, kind: input, shape index: {}]   ;;  %s2836_s1 = inlined_call_operand.hbm [shape: bf16[2,16,16], index: 1, kind: input, shape index: {}]   ;;  %s2837_s2 = inlined_call_operand.hbm [shape: f32[2,1,128], index: 2, kind: output, shape index: {}]  }
   0x1   :  { %9 = vsyncpa [#allocation3 + $0x1], 0 }
   0x2   :  { %10 = vsyncpa [#allocation6], 0 }
   0x3   :  { %12 = vsyncpa [#allocation6 + $0x1], 0 }
   0x4   :  { %13 = vsyncpa [#allocation4], 0 }
   0x5   :  { %15 = vsyncpa [#allocation4 + $0x1], 0  ;;  %s1800_s9 = smov 0   ;;  %s1802_s10 = smov 0  }
   0x6   :  { %s1804_s11 = smov 0   ;;  %s1806_s12 = smov 0  }
   0x7 LB: > { %s1821_s13 = sadd.s32 4294967295, %s1773_s12   ;;  %s1514_s14 = sadd.s32 4294967294, %s1773_s12   ;;  %s1773_s12 = sphi %s1806_s12, %s2877_s12   ;;  %s1769_s11 = sphi %s1804_s11, %s2876_s11   ;;  %s1765_s10 = sphi %s1802_s10, %s2875_s10   ;;  %s1761_s9 = sphi %s1800_s9, %s2874_s9  }
   0x8   : > { %s1825_s15 = sadd.s32 1, %s1773_s12   ;;  %s28_s16 = sadd.s32 1, %s1769_s11 }
   0x9   : > { %s25_s17 = ssub.s32 %s1773_s12, %s1825_s15  ;;  %p35_p0 = scmp.ne.s32.totalorder %s1769_s11, %s1765_s10 }
   0xa   : > { %p26_p1 = scmp.eq.s32.totalorder %s25_s17, 0  ;;  %p36_p2 = scmp.eq.s32.totalorder %s1773_s12, 0 }
   0xb   : > { %p41_p3 = scmp.ne.s32.totalorder %s1765_s10, %s1761_s9  ;;  %p42_p4 = scmp.eq.s32.totalorder %s1821_s13, 0 }
   0xc   : > { %s1837_s18 = scalar_select %p26_p1, %s1769_s11, %s28_s16  }
   0xd   : > { %p1839_p5 = por %p36_p2, %p35_p0  ;;  %p1843_p6 = por %p42_p4, %p41_p3 }
   0xe   : > { %p91_p7 = scmp.eq.s32.totalorder %s1821_s13, 1  ;;  %p97_p8 = scmp.eq.s32.totalorder %s1514_s14, 1 }
   0xf   : > { %s2850_s20 = scalar_select %p1843_p6, 1, 0 }
  0x10   : > { %p1582_p10 = scmp.lt.s32.totalorder %s1773_s12, 2  ;;  %p1850_p11 = por %p91_p7, %p35_p0 }
  0x11   : > { %p1854_p12 = por %p97_p8, %p41_p3  ;;  %s1859_s23 = sand.u32 1, %s1769_s11  }
  0x12   : > { %s2851_s21 = scalar_select %p1850_p11, 1, 0 }
  0x13   : > { %s2852_s22 = scalar_select %p1854_p12, 1, 0 }
  0x14   : > { %s1555_s24 = sshll.u32 %s1773_s12, 7  ;;  %s1517_s25 = sshll.u32 %s1859_s23, 3 }
  0x15   : > { %s1868_s28 = scalar_lea.hbm %s2835_s0, %s1555_s24  ;;  %s121_s29 = scalar_lea.vmem [#allocation2], %s1517_s25 }
  0x16   : > { %s128_s30 = sshll.u32 %s121_s29, 4  ;;  %p1874_p13 = pnand %p1582_p10, %p1839_p5  ;;  %s1878_s30 = int_to_ptr.vmem [resolvable:$true] %s128_s30 }
  0x17   : > { %s118_s4 = scalar_lea.sflag [#allocation3], %s1859_s23  ;;  %s1643_s5 = scalar_lea.hbm %s1868_s28, 128 }
  0x18   : > { %p1644_p0 = scmp.ne.s32.totalorder %s1868_s28, %s1643_s5  ;;  %p1645_p1 = pneg %p1874_p13 }
  0x19   : > { %s1648_s8 = scalar_lea.hbm %s2835_s0, 256  ;;  %p1649_p4 = scmp.lt.u32.totalorder %s1868_s28, %s2835_s0 }
  0x1a   : > { %p1646_p2 = pnand %p1645_p1, %p1644_p0  ;;  %p1650_p5 = scmp.lt.u32.totalorder %s1648_s8, %s1643_s5 }
  0x1b   : > { %p1652_p8 = scmp.lt.u32.totalorder %s1643_s5, %s1868_s28 }
  0x1c   : > { %p1647_p3 = pneg %p1646_p2  ;;  %p1651_p7 = por %p1650_p5, %p1649_p4 }
  0x1e   : > { %p1653_p10 = por %p1652_p8, %p1651_p7 }
  0x20   : > { %p1654_p9 = pnand %p1653_p10, %p1647_p3 }
  0x22   : > { %1657 = shalt.err (!%p1654_p9)
}
  0x23   : > { %s1658_s17 = scalar_lea.vmem %s1878_s30, 128  ;;  %s1775_s19 = smov [#allocation2]  }
  0x24   : > { %p1659_p0 = scmp.ne.s32.totalorder %s1878_s30, %s1658_s17  ;;  %s1663_s26 = sshll.u32 %s1775_s19, 4  ;;  %s1664_s26 = int_to_ptr.vmem [resolvable:$false] %s1663_s26 }
  0x25   : > { %s1665_s27 = scalar_lea.vmem %s1664_s26, 256  ;;  %p1666_p11 = scmp.lt.s32.totalorder %s1878_s30, %s1664_s26 }
  0x26   : > { %p1661_p2 = pnand %p1659_p0, %p1645_p1  ;;  %p1667_p4 = scmp.lt.s32.totalorder %s1665_s27, %s1658_s17 }
  0x28   : > { %p1662_p12 = pneg %p1661_p2  ;;  %p1668_p5 = por %p1667_p4, %p1666_p11 }
  0x2a   : > { %p1669_p7 = pnand %p1668_p5, %p1662_p12 }
  0x2c   : > { %1672 = shalt.err (!%p1669_p7)
}
  0x2d   : > { %s1776_s29 = smov 64   ;;  %s1777_s5 = smov 4  }
  0x2e   : > { %1574 = dma.hbm_to_vmem [thread:$0]  (!%p1874_p13), %s1868_s28, 128, %s1878_s30, %s118_s4, %s1776_s29, %s1776_s29, %s1777_s5  }
  0x2f   : > { %p1523_p9 = scmp.ge.s32.totalorder %s1773_s12, 1  ;;  %p157_p11 = scmp.lt.s32.totalorder %s1773_s12, 3 }
  0x30   : > { %s1922_s14 = scalar_lea.hbm %s2836_s1, %s1555_s24  ;;  %s142_s16 = scalar_lea.vmem [#allocation5], %s1517_s25 }
  0x31   : > { %p1913_p12 = pnand %p1523_p9, %p157_p11  ;;  %s149_s17 = sshll.u32 %s142_s16, 4  ;;  %s1926_s17 = int_to_ptr.vmem [resolvable:$true] %s149_s17 }
  0x32   : > { %s139_s28 = scalar_lea.sflag [#allocation6], %s1859_s23  ;;  %s1673_s30 = scalar_lea.hbm %s1922_s14, 128 }
  0x33   : > { %p1674_p3 = scmp.ne.s32.totalorder %s1922_s14, %s1673_s30  ;;  %s1678_s24 = scalar_lea.hbm %s2836_s1, 256 }
  0x34   : > { %p1679_p0 = scmp.lt.u32.totalorder %s1922_s14, %s2836_s1  ;;  %p1680_p2 = scmp.lt.u32.totalorder %s1678_s24, %s1673_s30 }
  0x35   : > { %p1676_p8 = pnand %p1674_p3, %p1645_p1  ;;  %p1682_p5 = scmp.lt.u32.totalorder %s1673_s30, %s1922_s14 }
  0x36   : > { %p1681_p4 = por %p1680_p2, %p1679_p0 }
  0x37   : > { %p1677_p10 = pneg %p1676_p8 }
  0x38   : > { %p1683_p7 = por %p1682_p5, %p1681_p4 }
  0x3a   : > { %p1684_p9 = pnand %p1683_p7, %p1677_p10 }
  0x3c   : > { %1687 = shalt.err (!%p1684_p9)
}
  0x3d   : > { %s1688_s25 = scalar_lea.vmem %s1926_s17, 128  ;;  %s1778_s7 = smov [#allocation5]  }
  0x3e   : > { %p1689_p11 = scmp.ne.s32.totalorder %s1926_s17, %s1688_s25  ;;  %s1693_s8 = sshll.u32 %s1778_s7, 4  ;;  %s1694_s8 = int_to_ptr.vmem [resolvable:$false] %s1693_s8 }
  0x3f   : > { %s1695_s16 = scalar_lea.vmem %s1694_s8, 256  ;;  %p1696_p6 = scmp.lt.s32.totalorder %s1926_s17, %s1694_s8 }
  0x40   : > { %p1691_p3 = pnand %p1689_p11, %p1645_p1  ;;  %p1697_p0 = scmp.lt.s32.totalorder %s1695_s16, %s1688_s25 }
  0x42   : > { %p1692_p8 = pneg %p1691_p3  ;;  %p1698_p2 = por %p1697_p0, %p1696_p6 }
  0x44   : > { %p1699_p4 = pnand %p1698_p2, %p1692_p8 }
  0x46   : > { %1702 = shalt.err (!%p1699_p4)
}
  0x47   : > { %1577 = dma.hbm_to_vmem [thread:$0]  (!%p1874_p13), %s1922_s14, 128, %s1926_s17, %s139_s28, %s1776_s29, %s1776_s29, %s1777_s5  }
  0x48   : > { %161 = sbr.rel (%p1913_p12) target bundleno = 5547 (0x15ab), region = 28 }
  0x4f   : > { %s1960_s30 = sand.u32 1, %s1765_s10   ;;  %p2855_p6 = scmp.ne.s32.totalorder %s2850_s20, 0 }
  0x50   : > { %s1524_s4 = sshll.u32 %s1960_s30, 3  ;;  %s164_s19 = scalar_lea.sflag [#allocation3], %s1960_s30 }
  0x51   : > { %s167_s3 = scalar_lea.vmem [#allocation2], %s1524_s4 }
  0x52   : > { %1748 = dma.done.wait (%p2855_p6), %s164_s19, 128  }
  0x53   : > { %1750 = vsyncadd (%p2855_p6), %s164_s19, 4294967168  ;;  %s173_s23 = scalar_lea.sflag [#allocation6], %s1960_s30  ;;  %s176_s29 = scalar_lea.vmem [#allocation5], %s1524_s4 }
  0x54   : > { %1752 = dma.done.wait (%p2855_p6), %s173_s23, 128  }
  0x55   : > { %1754 = vsyncadd (%p2855_p6), %s173_s23, 4294967168  ;;  %v201_v0 = vlaneseq  ;;  %s1779_s5 = smov 16   ;;  %v1558_v2 = vld [vmem:[%s167_s3] sm:$0xff]   ;;  %v1562_v3 = vld [vmem:[%s176_s29] sm:$0xff]   ;;  %s1780_s20 = smov 15   ;;  %vm236_vm0 = vcmask 1047680  }
  0x56   : > { %v1560_v4 = vunpack.c.h.bf16 %v1558_v2  ;;  %v1564_v5 = vunpack.c.h.bf16 %v1562_v3  ;;  %v1559_v6 = vunpack.c.l.bf16 %v1558_v2  ;;  %v1563_v7 = vunpack.c.l.bf16 %v1562_v3  ;;  %s1781_s6 = smov 1   ;;  %s1782_s14 = smov 113  }
  0x57   : > { %v205_v1 = vand.u32 127, %v201_v0  ;;  %s1783_s17 = smov 127   ;;  %v2013_v36 = vshrl.u32 %v201_v0, 7  ;;  %vm327_vm9 = vcmask 130048   ;;  %s1552_s28 = sshll.u32 %s1821_s13, 4 }
  0x58   : > { %v266_v8 = vsub.f32 %v1560_v4, %v1564_v5  ;;  %v265_v9 = vsub.f32 %v1559_v6, %v1563_v7  ;;  %s200_s24 = scalar_lea.vmem [#allocation7], %s1960_s30  ;;  %s2791_s7 = scalar_lea.hbm %s2837_s2, %s1552_s28 }
  0x59   : > { %237 = vrot.lane.b32.xlu0 %v205_v1, %s1779_s5  ;;  %v203_v37 = vadd.s32 8, %v2013_v36  ;;  %v206_v38 = vrot.slane %v2013_v36, 7  ;;  %vm208_vm3 = vcmp.lt.s32.totalorder %v2013_v36, 1  ;;  %v221_v41 = vrot.slane %v2013_v36, 1  ;;  %s1425_s26 = sshll.u32 %s200_s24, 4  ;;  %s1413_s8 = scalar_lea.sflag [#allocation4], %s1960_s30  ;;  %s2793_s26 = int_to_ptr.vmem [resolvable:$true] %s1425_s26 }
  0x5a   : > { %v1974_v10 = vmul.f32 %v266_v8, %v266_v8  ;;  %v1976_v11 = vmul.f32 %v265_v9, %v265_v9  ;;  %vm223_vm4 = vcmp.lt.s32.totalorder %v2013_v36, 7  ;;  %s1703_s16 = scalar_lea.vmem %s2793_s26, 16  ;;  %p2871_p1 = scmp.ne.s32.totalorder %s2851_s21, 0 }
  0x5b   : > { %v207_v39 = vrot.slane %v203_v37, 7  ;;  %v222_v42 = vrot.slane %v203_v37, 1  ;;  %p1704_p13 = scmp.ne.s32.totalorder %s2793_s26, %s1703_s16  ;;  %s1784_s13 = smov [#allocation7]  }
  0x5c   : > { %284 = vrot.lane.b32.xlu1 %v1974_v10, %s1779_s5  ;;  %v270_v54 = vrot.slane %v1974_v10, 7  ;;  %v269_v55 = vrot.slane %v1976_v11, 7  ;;  %v276_v59 = vrot.slane %v1974_v10, 1  ;;  %v275_v61 = vrot.slane %v1976_v11, 1  ;;  %s1707_s4 = sshll.u32 %s1784_s13, 4  ;;  %s1708_s4 = int_to_ptr.vmem [resolvable:$false] %s1707_s4 }
  0x5d   : > { %281 = vrot.lane.b32.xlu0 %v1976_v11, %s1779_s5  ;;  %v209_v40 = vsel %vm208_vm3, %v206_v38, %v207_v39  ;;  %v210_v43 = vsel %vm208_vm3, %v207_v39, %v206_v38  ;;  %v225_v45 = vsel %vm223_vm4, %v222_v42, %v221_v41  ;;  %v224_v47 = vsel %vm223_vm4, %v221_v41, %v222_v42  ;;  %p1705_p12 = pnand %p1704_p13, %p2871_p1  ;;  %s1709_s19 = scalar_lea.vmem %s1708_s4, 32 }
  0x5e   : > { %v212_v44 = vsub.s32 %v209_v40, %v203_v37  ;;  %v211_v46 = vsub.s32 %v210_v43, %v2013_v36  ;;  %v227_v49 = vsub.s32 %v225_v45, %v203_v37  ;;  %v226_v51 = vsub.s32 %v224_v47, %v2013_v36  ;;  %p1710_p5 = scmp.lt.s32.totalorder %s2793_s26, %s1708_s4  ;;  %p1711_p7 = scmp.lt.s32.totalorder %s1709_s19, %s1703_s16 }
  0x5f   : > { %v271_v60 = vsel %vm208_vm3, %v269_v55, %v270_v54  ;;  %v272_v63 = vsel %vm208_vm3, %v270_v54, %v269_v55  ;;  %v278_v2 = vsel %vm223_vm4, %v276_v59, %v275_v61  ;;  %v277_v3 = vsel %vm223_vm4, %v275_v61, %v276_v59  ;;  %p1706_p10 = pneg %p1705_p12 }
  0x60   : > { %v217_v48 = vsub.s32 0, %v212_v44  ;;  %v214_v50 = vsub.s32 0, %v211_v46  ;;  %v232_v53 = vsub.s32 0, %v227_v49  ;;  %v229_v57 = vsub.s32 0, %v226_v51  ;;  %p1712_p9 = por %p1711_p7, %p1710_p5 }
  0x61   : > { %243 = vrot.lane.b32.xlu0 %v205_v1, %s1780_s20 }
  0x62   : > { %v2030_v52 = vmin.u32 %v217_v48, %v212_v44  ;;  %v2034_v56 = vmin.u32 %v214_v50, %v211_v46  ;;  %v2037_v58 = vmin.u32 %v232_v53, %v227_v49  ;;  %v2044_v62 = vmin.u32 %v229_v57, %v226_v51  ;;  %p1713_p11 = pnand %p1712_p9, %p1706_p10 }
  0x64   : > { %vm220_vm5 = vcmp.eq.s32.totalorder %v2030_v52, 1  ;;  %vm219_vm6 = vcmp.eq.s32.totalorder %v2034_v56, 1  ;;  %vm235_vm7 = vcmp.eq.s32.totalorder %v2037_v58, 1  ;;  %vm234_vm8 = vcmp.eq.s32.totalorder %v2044_v62, 1 }
  0x65   : > { %v274_v0 = vsel %vm220_vm5, %v271_v60, 0.0  ;;  %v280_v6 = vsel %vm235_vm7, %v278_v2, 0.0  ;;  %v279_v7 = vsel %vm234_vm8, %v277_v3, 0.0 }
  0x66   : > { %v298_v4 = vadd.f32 %v274_v0, %v1974_v10 }
  0x68   : > { %v300_v8 = vadd.f32 %v298_v4, %v280_v6 }
  0xcb   : > { %v238_v12 = vpop.permute.xlu0 %237 }
  0xcc   : > { %v239_v13 = vsel %vm236_vm0, %v238_v12, %v205_v1 }
  0xcd   : > { %240 = vrot.lane.b32.xlu1 %v239_v13, %s1779_s5 }
  0xce   : > { %v285_v14 = vpop.permute.xlu1 %284 }
  0xcf   : > { %v282_v15 = vpop.permute.xlu0 %281  ;;  %v286_v16 = vsel %vm236_vm0, %v285_v14, %v1974_v10 }
  0xd0   : > { %v283_v17 = vsel %vm236_vm0, %v282_v15, %v1976_v11 }
  0xd1   : > { %250 = vrot.lane.b32.xlu1 %v205_v1, %s1781_s6  ;;  %287 = vrot.lane.b32.xlu0 %v283_v17, %s1779_s5 }
  0xd3   : > { %v244_v18 = vpop.permute.xlu0 %243 }
  0xd5   : > { %289 = vrot.lane.b32.xlu1 %v286_v16, %s1779_s5 }
 0x13f   : > { %v241_v19 = vpop.permute.xlu1 %240 }
 0x140   : > { %v242_v20 = vsel %vm236_vm0, %v241_v19, %v205_v1  ;;  %v273_v1 = vsel %vm219_vm6, %v272_v63, 0.0 }
 0x141   : > { %v245_v21 = vsub.s32 %v242_v20, %v244_v18  ;;  %v297_v5 = vadd.f32 %v273_v1, %v1976_v11 }
 0x143   : > { %v247_v22 = vsub.s32 0, %v245_v21  ;;  %v251_v23 = vpop.permute.xlu1 %250  ;;  %v288_v29 = vpop.permute.xlu0 %287  ;;  %v299_v9 = vadd.f32 %v297_v5, %v279_v7 }
 0x144   : > { %v252_v24 = vsub.s32 %v242_v20, %v251_v23  ;;  %v291_v31 = vsel %vm236_vm0, %v288_v29, %v1976_v11 }
 0x145   : > { %v1991_v25 = vmin.u32 %v247_v22, %v245_v21 }
 0x146   : > { %v254_v26 = vsub.s32 0, %v252_v24 }
 0x147   : > { %v290_v28 = vpop.permute.xlu1 %289  ;;  %vm249_vm1 = vcmp.eq.s32.totalorder %v1991_v25, 1 }
 0x148   : > { %v1993_v27 = vmin.u32 %v254_v26, %v252_v24  ;;  %v292_v30 = vsel %vm236_vm0, %v290_v28, %v1974_v10  ;;  %v293_v33 = vsel %vm249_vm1, %v291_v31, 0.0 }
 0x149   : > { %v294_v32 = vsel %vm249_vm1, %v292_v30, 0.0  ;;  %303 = vrot.lane.b32.xlu0 %v293_v33, %s1782_s14 }
 0x14a   : > { %vm256_vm2 = vcmp.eq.s32.totalorder %v1993_v27, 1  ;;  %305 = vrot.lane.b32.xlu1 %v294_v32, %s1782_s14 }
 0x14b   : > { %v296_v34 = vsel %vm256_vm2, %v292_v30, 0.0  ;;  %v295_v35 = vsel %vm256_vm2, %v291_v31, 0.0 }
 0x14d   : > { %313 = vrot.lane.b32.xlu0 %v295_v35, %s1783_s17 }
 0x14e   : > { %315 = vrot.lane.b32.xlu1 %v296_v34, %s1783_s17 }
 0x1bb   : > { %v304_v13 = vpop.permute.xlu0 %303 }
 0x1bc   : > { %v306_v12 = vpop.permute.xlu1 %305  ;;  %v309_v15 = vadd.f32 %v304_v13, %v299_v9 }
 0x1bd   : > { %v310_v14 = vadd.f32 %v306_v12, %v300_v8 }
 0x1bf   : > { %v314_v17 = vpop.permute.xlu0 %313 }
 0x1c0   : > { %v316_v16 = vpop.permute.xlu1 %315  ;;  %v319_v19 = vadd.f32 %v314_v17, %v309_v15 }
 0x1c1   : > { %v320_v18 = vadd.f32 %v316_v16, %v310_v14 }
 0x1c2   : > { %v321_v10 = vmul.f32 0.2, %v319_v19 }
 0x1c3   : > { %v322_v20 = vmul.f32 0.2, %v320_v18 }
 0x1c4   : > { %v1532_v11 = vadd.f32 -0.5, %v321_v10 }
 0x1c5   : > { %v1533_v21 = vadd.f32 -0.5, %v322_v20 }
 0x1c6   : > { %v2066_v23 = vmax.f32 %v1532_v11, 0.0 }
 0x1c7   : > { %v2064_v22 = vmax.f32 %v1533_v21, 0.0 }
 0x1c8   : > { %v328_v24 = vsel %vm327_vm9, %v2066_v23, -inf  ;;  %v341_v28 = vsel %vm327_vm9, %v2066_v23, inf }
 0x1c9   : > { %v331_v26 = vsel %vm327_vm9, %v2064_v22, -inf  ;;  %329 = vmax.xlane.f32.xlu0 %v328_v24  ;;  %v344_v29 = vsel %vm327_vm9, %v2064_v22, inf  ;;  %v357_v25 = vsel %vm327_vm9, %v2064_v22, 0.0 }
 0x1ca   : > { %332 = vmax.xlane.f32.xlu1 %v331_v26 }
 0x1cd   : > { %342 = vmin.xlane.f32.xlu0 %v341_v28 }
 0x1d1   : > { %345 = vmin.xlane.f32.xlu0 %v344_v29 }
 0x256   : > { %v330_v30 = vpop.xlane.xlu0 %329 }
 0x257   : > { %v333_v31 = vpop.xlane.xlu1 %332 }
 0x258   : > { %v334_v32 = vmax.f32 %v330_v30, %v333_v31 }
 0x25a   : > { %v335_v33 = vrot.slane %v334_v32, 4  ;;  %v343_v34 = vpop.xlane.xlu0 %342 }
 0x25c   : > { %v336_v35 = vmax.f32 %v334_v32, %v335_v33 }
 0x25e   : > { %v346_v37 = vpop.xlane.xlu0 %345  ;;  %v337_v38 = vrot.slane %v336_v35, 2 }
 0x25f   : > { %v347_v39 = vmin.f32 %v343_v34, %v346_v37 }
 0x260   : > { %v338_v41 = vmax.f32 %v336_v35, %v337_v38 }
 0x261   : > { %v348_v40 = vrot.slane %v347_v39, 4 }
 0x262   : > { %v339_v44 = vrot.slane %v338_v41, 1 }
 0x263   : > { %v349_v42 = vmin.f32 %v347_v39, %v348_v40 }
 0x264   : > { %v340_v47 = vmax.f32 %v338_v41, %v339_v44 }
 0x265   : > { %v350_v43 = vrot.slane %v349_v42, 2 }
 0x267   : > { %v351_v45 = vmin.f32 %v349_v42, %v350_v43 }
 0x269   : > { %v352_v46 = vrot.slane %v351_v45, 1 }
 0x26b   : > { %v2076_v48 = vmin.f32 %v351_v45, %v352_v46 }
 0x26d   : > { %v2079_v49 = vsub.f32 %v340_v47, %v2076_v48  ;;  %v372_v51 = vsub.f32 %v2064_v22, %v2076_v48  ;;  %v371_v53 = vsub.f32 %v2066_v23, %v2076_v48 }
 0x26f   : > { %vm368_vm10 = vcmp.ne.f32.partialorder %v2079_v49, 0.0 }
 0x270   : > { %v369_v50 = vsel %vm368_vm10, %v2079_v49, 1.0 }
 0x271   : > { %1623 = vrcp.f32 %v369_v50 }
 0x27b   : > { %v2089_v54 = vpop.eup %1623 }
 0x27c   : > { %v374_v55 = vmul.f32 %v2089_v54, %v372_v51  ;;  %v373_v57 = vmul.f32 %v2089_v54, %v371_v53 }
 0x27e   : > { %v378_v59 = vsel %vm368_vm10, %v374_v55, %v2064_v22  ;;  %v377_v60 = vsel %vm368_vm10, %v373_v57, %v2066_v23 }
 0x27f   : > { %399 = vrot.lane.b32.xlu0 %v378_v59, %s1779_s5  ;;  %396 = vrot.lane.b32.xlu1 %v377_v60, %s1779_s5  ;;  %v385_v12 = vrot.slane %v378_v59, 7  ;;  %v384_v13 = vrot.slane %v377_v60, 7  ;;  %v391_v15 = vrot.slane %v378_v59, 1  ;;  %v390_v16 = vrot.slane %v377_v60, 1 }
 0x281   : > { %v387_v14 = vsel %vm208_vm3, %v385_v12, %v384_v13  ;;  %v386_v18 = vsel %vm208_vm3, %v384_v13, %v385_v12  ;;  %v392_v19 = vsel %vm223_vm4, %v390_v16, %v391_v15  ;;  %v393_v26 = vsel %vm223_vm4, %v391_v15, %v390_v16 }
 0x282   : > { %v388_v17 = vsel %vm219_vm6, %v387_v14, 0.0  ;;  %v389_v10 = vsel %vm220_vm5, %v386_v18, 0.0  ;;  %v394_v11 = vsel %vm234_vm8, %v392_v19, 0.0  ;;  %v395_v32 = vsel %vm235_vm7, %v393_v26, 0.0 }
 0x283   : > { %v412_v20 = vadd.f32 %v388_v17, %v377_v60  ;;  %v413_v28 = vadd.f32 %v389_v10, %v378_v59 }
 0x285   : > { %v414_v24 = vadd.f32 %v412_v20, %v394_v11  ;;  %v415_v34 = vadd.f32 %v413_v28, %v395_v32 }
 0x2f1   : > { %v397_v61 = vpop.permute.xlu1 %396  ;;  %v400_v0 = vpop.permute.xlu0 %399 }
 0x2f2   : > { %v398_v63 = vsel %vm236_vm0, %v397_v61, %v377_v60  ;;  %v401_v1 = vsel %vm236_vm0, %v400_v0, %v378_v59 }
 0x2f3   : > { %402 = vrot.lane.b32.xlu1 %v398_v63, %s1779_s5 }
 0x2f7   : > { %404 = vrot.lane.b32.xlu1 %v401_v1, %s1779_s5 }
 0x365   : > { %v403_v2 = vpop.permute.xlu1 %402 }
 0x366   : > { %v406_v3 = vsel %vm236_vm0, %v403_v2, %v377_v60 }
 0x367   : > { %v408_v4 = vsel %vm249_vm1, %v406_v3, 0.0  ;;  %v410_v7 = vsel %vm256_vm2, %v406_v3, 0.0 }
 0x368   : > { %418 = vrot.lane.b32.xlu0 %v408_v4, %s1782_s14 }
 0x369   : > { %v405_v5 = vpop.permute.xlu1 %404 }
 0x36a   : > { %v407_v6 = vsel %vm236_vm0, %v405_v5, %v378_v59 }
 0x36b   : > { %v409_v8 = vsel %vm249_vm1, %v407_v6, 0.0  ;;  %v411_v9 = vsel %vm256_vm2, %v407_v6, 0.0 }
 0x36c   : > { %428 = vrot.lane.b32.xlu0 %v410_v7, %s1783_s17  ;;  %420 = vrot.lane.b32.xlu1 %v409_v8, %s1782_s14 }
 0x370   : > { %430 = vrot.lane.b32.xlu1 %v411_v9, %s1783_s17 }
 0x3da   : > { %v419_v21 = vpop.permute.xlu0 %418 }
 0x3db   : > { %v424_v29 = vadd.f32 %v419_v21, %v414_v24 }
 0x3de   : > { %v429_v30 = vpop.permute.xlu0 %428  ;;  %v421_v31 = vpop.permute.xlu1 %420 }
 0x3df   : > { %v434_v33 = vadd.f32 %v429_v30, %v424_v29  ;;  %v425_v37 = vadd.f32 %v421_v31, %v415_v34 }
 0x3e1   : > { %v436_v35 = vmul.f32 0.2, %v434_v33 }
 0x3e2   : > { %v431_v38 = vpop.permute.xlu1 %430 }
 0x3e3   : > { %v1534_v39 = vadd.f32 -0.5, %v436_v35  ;;  %v435_v40 = vadd.f32 %v431_v38, %v425_v37 }
 0x3e5   : > { %v2135_v41 = vmax.f32 %v1534_v39, 0.0  ;;  %v437_v42 = vmul.f32 0.2, %v435_v40 }
 0x3e7   : > { %v1535_v43 = vadd.f32 -0.5, %v437_v42  ;;  %v442_v44 = vsel %vm327_vm9, %v2135_v41, -inf  ;;  %v455_v46 = vsel %vm327_vm9, %v2135_v41, inf }
 0x3e8   : > { %443 = vmax.xlane.f32.xlu0 %v442_v44 }
 0x3e9   : > { %v2139_v45 = vmax.f32 %v1535_v43, 0.0 }
 0x3eb   : > { %v445_v47 = vsel %vm327_vm9, %v2139_v45, -inf  ;;  %v458_v50 = vsel %vm327_vm9, %v2139_v45, inf }
 0x3ec   : > { %456 = vmin.xlane.f32.xlu0 %v455_v46  ;;  %446 = vmax.xlane.f32.xlu1 %v445_v47 }
 0x3f0   : > { %459 = vmin.xlane.f32.xlu0 %v458_v50 }
 0x475   : > { %v444_v51 = vpop.xlane.xlu0 %443 }
 0x479   : > { %v457_v53 = vpop.xlane.xlu0 %456  ;;  %v447_v55 = vpop.xlane.xlu1 %446 }
 0x47a   : > { %v448_v57 = vmax.f32 %v444_v51, %v447_v55 }
 0x47c   : > { %v449_v59 = vrot.slane %v448_v57, 4 }
 0x47d   : > { %v460_v60 = vpop.xlane.xlu0 %459 }
 0x47e   : > { %v450_v61 = vmax.f32 %v448_v57, %v449_v59  ;;  %v461_v63 = vmin.f32 %v457_v53, %v460_v60 }
 0x480   : > { %v451_v0 = vrot.slane %v450_v61, 2  ;;  %v462_v1 = vrot.slane %v461_v63, 4 }
 0x482   : > { %v452_v2 = vmax.f32 %v450_v61, %v451_v0  ;;  %v463_v3 = vmin.f32 %v461_v63, %v462_v1 }
 0x484   : > { %v464_v4 = vrot.slane %v463_v3, 2  ;;  %v453_v5 = vrot.slane %v452_v2, 1 }
 0x486   : > { %v465_v6 = vmin.f32 %v463_v3, %v464_v4  ;;  %v454_v8 = vmax.f32 %v452_v2, %v453_v5 }
 0x488   : > { %v466_v7 = vrot.slane %v465_v6, 1 }
 0x48a   : > { %v2147_v9 = vmin.f32 %v465_v6, %v466_v7 }
 0x48c   : > { %v2150_v12 = vsub.f32 %v454_v8, %v2147_v9  ;;  %v486_v14 = vsub.f32 %v2139_v45, %v2147_v9  ;;  %v485_v15 = vsub.f32 %v2135_v41, %v2147_v9 }
 0x48e   : > { %vm482_vm11 = vcmp.ne.f32.partialorder %v2150_v12, 0.0 }
 0x48f   : > { %v483_v13 = vsel %vm482_vm11, %v2150_v12, 1.0 }
 0x490   : > { %1625 = vrcp.f32 %v483_v13 }
 0x49a   : > { %v2160_v16 = vpop.eup %1625 }
 0x49b   : > { %v488_v17 = vmul.f32 %v2160_v16, %v486_v14  ;;  %v487_v18 = vmul.f32 %v2160_v16, %v485_v15 }
 0x49d   : > { %v492_v19 = vsel %vm482_vm11, %v488_v17, %v2139_v45  ;;  %v491_v20 = vsel %vm482_vm11, %v487_v18, %v2135_v41 }
 0x49e   : > { %514 = vrot.lane.b32.xlu0 %v492_v19, %s1779_s5  ;;  %511 = vrot.lane.b32.xlu1 %v491_v20, %s1779_s5  ;;  %v500_v35 = vrot.slane %v492_v19, 7  ;;  %v499_v37 = vrot.slane %v491_v20, 7  ;;  %v506_v39 = vrot.slane %v492_v19, 1  ;;  %v505_v40 = vrot.slane %v491_v20, 1 }
 0x4a0   : > { %v502_v38 = vsel %vm208_vm3, %v500_v35, %v499_v37  ;;  %v501_v43 = vsel %vm208_vm3, %v499_v37, %v500_v35  ;;  %v507_v44 = vsel %vm223_vm4, %v505_v40, %v506_v39  ;;  %v508_v55 = vsel %vm223_vm4, %v506_v39, %v505_v40 }
 0x4a1   : > { %v503_v42 = vsel %vm219_vm6, %v502_v38, 0.0  ;;  %v504_v47 = vsel %vm220_vm5, %v501_v43, 0.0  ;;  %v509_v51 = vsel %vm234_vm8, %v507_v44, 0.0  ;;  %v510_v63 = vsel %vm235_vm7, %v508_v55, 0.0 }
 0x4a2   : > { %v527_v46 = vadd.f32 %v503_v42, %v491_v20  ;;  %v528_v57 = vadd.f32 %v504_v47, %v492_v19 }
 0x4a4   : > { %v529_v53 = vadd.f32 %v527_v46, %v509_v51  ;;  %v530_v1 = vadd.f32 %v528_v57, %v510_v63 }
 0x510   : > { %v512_v10 = vpop.permute.xlu1 %511  ;;  %v515_v11 = vpop.permute.xlu0 %514 }
 0x511   : > { %v513_v21 = vsel %vm236_vm0, %v512_v10, %v491_v20  ;;  %v516_v24 = vsel %vm236_vm0, %v515_v11, %v492_v19 }
 0x512   : > { %517 = vrot.lane.b32.xlu1 %v513_v21, %s1779_s5 }
 0x516   : > { %519 = vrot.lane.b32.xlu1 %v516_v24, %s1779_s5 }
 0x584   : > { %v518_v26 = vpop.permute.xlu1 %517 }
 0x585   : > { %v521_v28 = vsel %vm236_vm0, %v518_v26, %v491_v20 }
 0x586   : > { %v523_v29 = vsel %vm249_vm1, %v521_v28, 0.0  ;;  %v525_v32 = vsel %vm256_vm2, %v521_v28, 0.0 }
 0x587   : > { %533 = vrot.lane.b32.xlu0 %v523_v29, %s1782_s14 }
 0x588   : > { %v520_v30 = vpop.permute.xlu1 %519 }
 0x589   : > { %v522_v31 = vsel %vm236_vm0, %v520_v30, %v492_v19 }
 0x58a   : > { %v524_v33 = vsel %vm249_vm1, %v522_v31, 0.0  ;;  %v526_v34 = vsel %vm256_vm2, %v522_v31, 0.0 }
 0x58b   : > { %543 = vrot.lane.b32.xlu0 %v525_v32, %s1783_s17  ;;  %535 = vrot.lane.b32.xlu1 %v524_v33, %s1782_s14 }
 0x58f   : > { %545 = vrot.lane.b32.xlu1 %v526_v34, %s1783_s17 }
 0x5f9   : > { %v534_v50 = vpop.permute.xlu0 %533 }
 0x5fa   : > { %v539_v59 = vadd.f32 %v534_v50, %v529_v53 }
 0x5fd   : > { %v544_v60 = vpop.permute.xlu0 %543  ;;  %v536_v61 = vpop.permute.xlu1 %535 }
 0x5fe   : > { %v549_v0 = vadd.f32 %v544_v60, %v539_v59  ;;  %v540_v3 = vadd.f32 %v536_v61, %v530_v1 }
 0x600   : > { %v551_v2 = vmul.f32 0.2, %v549_v0 }
 0x601   : > { %v546_v4 = vpop.permute.xlu1 %545 }
 0x602   : > { %v1536_v5 = vadd.f32 -0.5, %v551_v2  ;;  %v550_v6 = vadd.f32 %v546_v4, %v540_v3 }
 0x604   : > { %v2206_v7 = vmax.f32 %v1536_v5, 0.0  ;;  %v552_v8 = vmul.f32 0.2, %v550_v6 }
 0x606   : > { %v1537_v13 = vadd.f32 -0.5, %v552_v8  ;;  %v557_v14 = vsel %vm327_vm9, %v2206_v7, -inf  ;;  %v570_v17 = vsel %vm327_vm9, %v2206_v7, inf }
 0x607   : > { %558 = vmax.xlane.f32.xlu0 %v557_v14 }
 0x608   : > { %v2210_v15 = vmax.f32 %v1537_v13, 0.0 }
 0x60a   : > { %v560_v18 = vsel %vm327_vm9, %v2210_v15, -inf  ;;  %v573_v19 = vsel %vm327_vm9, %v2210_v15, inf  ;;  %v586_v27 = vsel %vm327_vm9, %v2210_v15, 0.0 }
 0x60b   : > { %571 = vmin.xlane.f32.xlu0 %v570_v17  ;;  %561 = vmax.xlane.f32.xlu1 %v560_v18 }
 0x60f   : > { %574 = vmin.xlane.f32.xlu0 %v573_v19 }
 0x694   : > { %v559_v20 = vpop.xlane.xlu0 %558 }
 0x698   : > { %v572_v10 = vpop.xlane.xlu0 %571  ;;  %v562_v21 = vpop.xlane.xlu1 %561 }
 0x699   : > { %v563_v11 = vmax.f32 %v559_v20, %v562_v21 }
 0x69b   : > { %v564_v24 = vrot.slane %v563_v11, 4 }
 0x69c   : > { %v575_v26 = vpop.xlane.xlu0 %574 }
 0x69d   : > { %v565_v28 = vmax.f32 %v563_v11, %v564_v24  ;;  %v576_v29 = vmin.f32 %v572_v10, %v575_v26 }
 0x69f   : > { %v566_v30 = vrot.slane %v565_v28, 2  ;;  %v577_v31 = vrot.slane %v576_v29, 4 }
 0x6a1   : > { %v567_v32 = vmax.f32 %v565_v28, %v566_v30  ;;  %v578_v33 = vmin.f32 %v576_v29, %v577_v31 }
 0x6a3   : > { %v579_v34 = vrot.slane %v578_v33, 2  ;;  %v568_v35 = vrot.slane %v567_v32, 1 }
 0x6a5   : > { %v580_v37 = vmin.f32 %v578_v33, %v579_v34  ;;  %v569_v39 = vmax.f32 %v567_v32, %v568_v35 }
 0x6a7   : > { %v581_v38 = vrot.slane %v580_v37, 1 }
 0x6a9   : > { %v2218_v40 = vmin.f32 %v580_v37, %v581_v38 }
 0x6ab   : > { %v2221_v42 = vsub.f32 %v569_v39, %v2218_v40  ;;  %v601_v44 = vsub.f32 %v2210_v15, %v2218_v40  ;;  %v600_v46 = vsub.f32 %v2206_v7, %v2218_v40 }
 0x6ad   : > { %vm597_vm12 = vcmp.ne.f32.partialorder %v2221_v42, 0.0 }
 0x6ae   : > { %v598_v43 = vsel %vm597_vm12, %v2221_v42, 1.0 }
 0x6af   : > { %1627 = vrcp.f32 %v598_v43 }
 0x6b9   : > { %v2231_v47 = vpop.eup %1627 }
 0x6ba   : > { %v603_v50 = vmul.f32 %v2231_v47, %v601_v44  ;;  %v602_v51 = vmul.f32 %v2231_v47, %v600_v46 }
 0x6bc   : > { %v607_v53 = vsel %vm597_vm12, %v603_v50, %v2210_v15  ;;  %v606_v55 = vsel %vm597_vm12, %v602_v51, %v2206_v7 }
 0x6bd   : > { %629 = vrot.lane.b32.xlu0 %v607_v53, %s1779_s5  ;;  %626 = vrot.lane.b32.xlu1 %v606_v55, %s1779_s5  ;;  %v615_v8 = vrot.slane %v607_v53, 7  ;;  %v614_v13 = vrot.slane %v606_v55, 7  ;;  %v621_v17 = vrot.slane %v607_v53, 1  ;;  %v620_v18 = vrot.slane %v606_v55, 1 }
 0x6bf   : > { %v617_v14 = vsel %vm208_vm3, %v615_v8, %v614_v13  ;;  %v616_v20 = vsel %vm208_vm3, %v614_v13, %v615_v8  ;;  %v622_v10 = vsel %vm223_vm4, %v620_v18, %v621_v17  ;;  %v623_v29 = vsel %vm223_vm4, %v621_v17, %v620_v18 }
 0x6c0   : > { %v618_v19 = vsel %vm219_vm6, %v617_v14, 0.0  ;;  %v619_v11 = vsel %vm220_vm5, %v616_v20, 0.0  ;;  %v624_v26 = vsel %vm234_vm8, %v622_v10, 0.0  ;;  %v625_v34 = vsel %vm235_vm7, %v623_v29, 0.0 }
 0x6c1   : > { %v642_v21 = vadd.f32 %v618_v19, %v606_v55  ;;  %v643_v30 = vadd.f32 %v619_v11, %v607_v53 }
 0x6c3   : > { %v644_v28 = vadd.f32 %v642_v21, %v624_v26  ;;  %v645_v37 = vadd.f32 %v643_v30, %v625_v34 }
 0x72f   : > { %v627_v57 = vpop.permute.xlu1 %626  ;;  %v630_v60 = vpop.permute.xlu0 %629 }
 0x730   : > { %v628_v59 = vsel %vm236_vm0, %v627_v57, %v606_v55  ;;  %v631_v61 = vsel %vm236_vm0, %v630_v60, %v607_v53 }
 0x731   : > { %632 = vrot.lane.b32.xlu1 %v628_v59, %s1779_s5 }
 0x735   : > { %634 = vrot.lane.b32.xlu1 %v631_v61, %s1779_s5 }
 0x7a3   : > { %v633_v63 = vpop.permute.xlu1 %632 }
 0x7a4   : > { %v636_v0 = vsel %vm236_vm0, %v633_v63, %v606_v55 }
 0x7a5   : > { %v638_v1 = vsel %vm249_vm1, %v636_v0, 0.0  ;;  %v640_v4 = vsel %vm256_vm2, %v636_v0, 0.0 }
 0x7a6   : > { %648 = vrot.lane.b32.xlu0 %v638_v1, %s1782_s14 }
 0x7a7   : > { %v635_v2 = vpop.permute.xlu1 %634 }
 0x7a8   : > { %v637_v3 = vsel %vm236_vm0, %v635_v2, %v607_v53 }
 0x7a9   : > { %v639_v5 = vsel %vm249_vm1, %v637_v3, 0.0  ;;  %v641_v6 = vsel %vm256_vm2, %v637_v3, 0.0 }
 0x7aa   : > { %658 = vrot.lane.b32.xlu0 %v640_v4, %s1783_s17  ;;  %650 = vrot.lane.b32.xlu1 %v639_v5, %s1782_s14 }
 0x7ae   : > { %660 = vrot.lane.b32.xlu1 %v641_v6, %s1783_s17 }
 0x818   : > { %v649_v24 = vpop.permute.xlu0 %648 }
 0x819   : > { %v654_v31 = vadd.f32 %v649_v24, %v644_v28 }
 0x81c   : > { %v659_v32 = vpop.permute.xlu0 %658  ;;  %v651_v33 = vpop.permute.xlu1 %650 }
 0x81d   : > { %v664_v35 = vadd.f32 %v659_v32, %v654_v31  ;;  %v655_v39 = vadd.f32 %v651_v33, %v645_v37 }
 0x81f   : > { %v666_v38 = vmul.f32 0.2, %v664_v35 }
 0x820   : > { %v661_v43 = vpop.permute.xlu1 %660 }
 0x821   : > { %v1538_v44 = vadd.f32 -0.5, %v666_v38  ;;  %v665_v46 = vadd.f32 %v661_v43, %v655_v39 }
 0x823   : > { %v2277_v50 = vmax.f32 %v1538_v44, 0.0  ;;  %v667_v51 = vmul.f32 0.2, %v665_v46 }
 0x825   : > { %v1539_v55 = vadd.f32 -0.5, %v667_v51  ;;  %v672_v53 = vsel %vm327_vm9, %v2277_v50, -inf  ;;  %v685_v59 = vsel %vm327_vm9, %v2277_v50, inf  ;;  %v698_v22 = vsel %vm327_vm9, %v2277_v50, 0.0 }
 0x826   : > { %673 = vmax.xlane.f32.xlu0 %v672_v53 }
 0x827   : > { %v2281_v57 = vmax.f32 %v1539_v55, 0.0 }
 0x829   : > { %v675_v60 = vsel %vm327_vm9, %v2281_v57, -inf  ;;  %v688_v61 = vsel %vm327_vm9, %v2281_v57, inf }
 0x82a   : > { %686 = vmin.xlane.f32.xlu0 %v685_v59  ;;  %676 = vmax.xlane.f32.xlu1 %v675_v60 }
 0x82e   : > { %689 = vmin.xlane.f32.xlu0 %v688_v61 }
 0x8b3   : > { %v674_v63 = vpop.xlane.xlu0 %673 }
 0x8b7   : > { %v687_v0 = vpop.xlane.xlu0 %686  ;;  %v677_v1 = vpop.xlane.xlu1 %676 }
 0x8b8   : > { %v678_v2 = vmax.f32 %v674_v63, %v677_v1 }
 0x8ba   : > { %v679_v3 = vrot.slane %v678_v2, 4 }
 0x8bb   : > { %v690_v4 = vpop.xlane.xlu0 %689 }
 0x8bc   : > { %v680_v5 = vmax.f32 %v678_v2, %v679_v3  ;;  %v691_v6 = vmin.f32 %v687_v0, %v690_v4 }
 0x8be   : > { %v681_v8 = vrot.slane %v680_v5, 2  ;;  %v692_v13 = vrot.slane %v691_v6, 4 }
 0x8c0   : > { %v682_v14 = vmax.f32 %v680_v5, %v681_v8  ;;  %v693_v17 = vmin.f32 %v691_v6, %v692_v13 }
 0x8c2   : > { %v694_v18 = vrot.slane %v693_v17, 2  ;;  %v683_v19 = vrot.slane %v682_v14, 1 }
 0x8c4   : > { %v695_v20 = vmin.f32 %v693_v17, %v694_v18  ;;  %v684_v21 = vmax.f32 %v682_v14, %v683_v19 }
 0x8c6   : > { %v696_v10 = vrot.slane %v695_v20, 1 }
 0x8c8   : > { %v2289_v11 = vmin.f32 %v695_v20, %v696_v10 }
 0x8ca   : > { %v2292_v24 = vsub.f32 %v684_v21, %v2289_v11  ;;  %v715_v28 = vsub.f32 %v2277_v50, %v2289_v11  ;;  %v716_v29 = vsub.f32 %v2281_v57, %v2289_v11 }
 0x8cc   : > { %vm712_vm13 = vcmp.ne.f32.partialorder %v2292_v24, 0.0 }
 0x8cd   : > { %v713_v26 = vsel %vm712_vm13, %v2292_v24, 1.0 }
 0x8ce   : > { %1629 = vrcp.f32 %v713_v26 }
 0x8d8   : > { %v2302_v30 = vpop.eup %1629 }
 0x8d9   : > { %v718_v31 = vmul.f32 %v2302_v30, %v716_v29  ;;  %v717_v32 = vmul.f32 %v2302_v30, %v715_v28 }
 0x8db   : > { %v722_v33 = vsel %vm712_vm13, %v718_v31, %v2281_v57  ;;  %v721_v34 = vsel %vm712_vm13, %v717_v32, %v2277_v50 }
 0x8dc   : > { %744 = vrot.lane.b32.xlu0 %v722_v33, %s1779_s5  ;;  %741 = vrot.lane.b32.xlu1 %v721_v34, %s1779_s5  ;;  %v730_v61 = vrot.slane %v722_v33, 7  ;;  %v729_v63 = vrot.slane %v721_v34, 7  ;;  %v736_v1 = vrot.slane %v722_v33, 1  ;;  %v735_v2 = vrot.slane %v721_v34, 1 }
 0x8de   : > { %v732_v0 = vsel %vm208_vm3, %v730_v61, %v729_v63  ;;  %v731_v4 = vsel %vm208_vm3, %v729_v63, %v730_v61  ;;  %v737_v5 = vsel %vm223_vm4, %v735_v2, %v736_v1  ;;  %v738_v18 = vsel %vm223_vm4, %v736_v1, %v735_v2 }
 0x8df   : > { %v733_v3 = vsel %vm219_vm6, %v732_v0, 0.0  ;;  %v734_v8 = vsel %vm220_vm5, %v731_v4, 0.0  ;;  %v739_v14 = vsel %vm234_vm8, %v737_v5, 0.0  ;;  %v740_v26 = vsel %vm235_vm7, %v738_v18, 0.0 }
 0x8e0   : > { %v757_v6 = vadd.f32 %v733_v3, %v721_v34  ;;  %v758_v19 = vadd.f32 %v734_v8, %v722_v33 }
 0x8e2   : > { %v759_v17 = vadd.f32 %v757_v6, %v739_v14  ;;  %v760_v29 = vadd.f32 %v758_v19, %v740_v26 }
 0x94e   : > { %v742_v35 = vpop.permute.xlu1 %741  ;;  %v745_v38 = vpop.permute.xlu0 %744 }
 0x94f   : > { %v743_v37 = vsel %vm236_vm0, %v742_v35, %v721_v34  ;;  %v746_v39 = vsel %vm236_vm0, %v745_v38, %v722_v33 }
 0x950   : > { %747 = vrot.lane.b32.xlu1 %v743_v37, %s1779_s5 }
 0x954   : > { %749 = vrot.lane.b32.xlu1 %v746_v39, %s1779_s5 }
 0x9c2   : > { %v748_v43 = vpop.permute.xlu1 %747 }
 0x9c3   : > { %v751_v44 = vsel %vm236_vm0, %v748_v43, %v721_v34 }
 0x9c4   : > { %v753_v46 = vsel %vm249_vm1, %v751_v44, 0.0  ;;  %v755_v53 = vsel %vm256_vm2, %v751_v44, 0.0 }
 0x9c5   : > { %763 = vrot.lane.b32.xlu0 %v753_v46, %s1782_s14 }
 0x9c6   : > { %v750_v51 = vpop.permute.xlu1 %749 }
 0x9c7   : > { %v752_v55 = vsel %vm236_vm0, %v750_v51, %v722_v33 }
 0x9c8   : > { %v754_v59 = vsel %vm249_vm1, %v752_v55, 0.0  ;;  %v756_v60 = vsel %vm256_vm2, %v752_v55, 0.0 }
 0x9c9   : > { %773 = vrot.lane.b32.xlu0 %v755_v53, %s1783_s17  ;;  %765 = vrot.lane.b32.xlu1 %v754_v59, %s1782_s14 }
 0x9cd   : > { %775 = vrot.lane.b32.xlu1 %v756_v60, %s1783_s17 }
 0xa37   : > { %v764_v13 = vpop.permute.xlu0 %763 }
 0xa38   : > { %v769_v20 = vadd.f32 %v764_v13, %v759_v17 }
 0xa3b   : > { %v774_v10 = vpop.permute.xlu0 %773  ;;  %v766_v21 = vpop.permute.xlu1 %765 }
 0xa3c   : > { %v779_v28 = vadd.f32 %v774_v10, %v769_v20  ;;  %v770_v32 = vadd.f32 %v766_v21, %v760_v29 }
 0xa3e   : > { %v781_v31 = vmul.f32 0.2, %v779_v28 }
 0xa3f   : > { %v776_v34 = vpop.permute.xlu1 %775 }
 0xa40   : > { %v1540_v35 = vadd.f32 -0.5, %v781_v31  ;;  %v780_v37 = vadd.f32 %v776_v34, %v770_v32 }
 0xa42   : > { %v2348_v38 = vmax.f32 %v1540_v35, 0.0  ;;  %v782_v39 = vmul.f32 0.2, %v780_v37 }
 0xa44   : > { %v1541_v43 = vadd.f32 -0.5, %v782_v39  ;;  %v787_v33 = vsel %vm327_vm9, %v2348_v38, -inf  ;;  %v800_v46 = vsel %vm327_vm9, %v2348_v38, inf  ;;  %v813_v15 = vsel %vm327_vm9, %v2348_v38, 0.0 }
 0xa45   : > { %788 = vmax.xlane.f32.xlu0 %v787_v33 }
 0xa46   : > { %v2352_v44 = vmax.f32 %v1541_v43, 0.0 }
 0xa48   : > { %v790_v51 = vsel %vm327_vm9, %v2352_v44, -inf  ;;  %v803_v55 = vsel %vm327_vm9, %v2352_v44, inf }
 0xa49   : > { %801 = vmin.xlane.f32.xlu0 %v800_v46  ;;  %791 = vmax.xlane.f32.xlu1 %v790_v51 }
 0xa4d   : > { %804 = vmin.xlane.f32.xlu0 %v803_v55 }
 0xad2   : > { %v789_v53 = vpop.xlane.xlu0 %788 }
 0xad6   : > { %v802_v59 = vpop.xlane.xlu0 %801  ;;  %v792_v60 = vpop.xlane.xlu1 %791 }
 0xad7   : > { %v793_v61 = vmax.f32 %v789_v53, %v792_v60 }
 0xad9   : > { %v794_v63 = vrot.slane %v793_v61, 4 }
 0xada   : > { %v805_v0 = vpop.xlane.xlu0 %804 }
 0xadb   : > { %v795_v1 = vmax.f32 %v793_v61, %v794_v63  ;;  %v806_v2 = vmin.f32 %v802_v59, %v805_v0 }
 0xadd   : > { %v796_v3 = vrot.slane %v795_v1, 2  ;;  %v807_v4 = vrot.slane %v806_v2, 4 }
 0xadf   : > { %v797_v5 = vmax.f32 %v795_v1, %v796_v3  ;;  %v808_v6 = vmin.f32 %v806_v2, %v807_v4 }
 0xae1   : > { %v809_v8 = vrot.slane %v808_v6, 2  ;;  %v798_v13 = vrot.slane %v797_v5, 1 }
 0xae3   : > { %v810_v14 = vmin.f32 %v808_v6, %v809_v8  ;;  %v799_v18 = vmax.f32 %v797_v5, %v798_v13 }
 0xae5   : > { %v811_v17 = vrot.slane %v810_v14, 1 }
 0xae7   : > { %v2360_v19 = vmin.f32 %v810_v14, %v811_v17 }
 0xae9   : > { %v2363_v20 = vsub.f32 %v799_v18, %v2360_v19  ;;  %v830_v21 = vsub.f32 %v2348_v38, %v2360_v19  ;;  %v831_v26 = vsub.f32 %v2352_v44, %v2360_v19 }
 0xaeb   : > { %vm827_vm14 = vcmp.ne.f32.partialorder %v2363_v20, 0.0 }
 0xaec   : > { %v828_v10 = vsel %vm827_vm14, %v2363_v20, 1.0 }
 0xaed   : > { %1631 = vrcp.f32 %v828_v10 }
 0xaf7   : > { %v2373_v28 = vpop.eup %1631 }
 0xaf8   : > { %v833_v29 = vmul.f32 %v2373_v28, %v831_v26  ;;  %v832_v31 = vmul.f32 %v2373_v28, %v830_v21 }
 0xafa   : > { %v837_v32 = vsel %vm827_vm14, %v833_v29, %v2352_v44  ;;  %v836_v34 = vsel %vm827_vm14, %v832_v31, %v2348_v38 }
 0xafb   : > { %859 = vrot.lane.b32.xlu0 %v837_v32, %s1779_s5  ;;  %856 = vrot.lane.b32.xlu1 %v836_v34, %s1779_s5  ;;  %v845_v63 = vrot.slane %v837_v32, 7  ;;  %v844_v0 = vrot.slane %v836_v34, 7  ;;  %v851_v2 = vrot.slane %v837_v32, 1  ;;  %v850_v3 = vrot.slane %v836_v34, 1 }
 0xafd   : > { %v847_v1 = vsel %vm208_vm3, %v845_v63, %v844_v0  ;;  %v846_v5 = vsel %vm208_vm3, %v844_v0, %v845_v63  ;;  %v852_v6 = vsel %vm223_vm4, %v850_v3, %v851_v2  ;;  %v853_v10 = vsel %vm223_vm4, %v851_v2, %v850_v3 }
 0xafe   : > { %v848_v4 = vsel %vm219_vm6, %v847_v1, 0.0  ;;  %v849_v13 = vsel %vm220_vm5, %v846_v5, 0.0  ;;  %v854_v17 = vsel %vm234_vm8, %v852_v6, 0.0 }
 0xaff   : > { %v872_v8 = vadd.f32 %v848_v4, %v836_v34  ;;  %v873_v21 = vadd.f32 %v849_v13, %v837_v32 }
 0xb01   : > { %v874_v18 = vadd.f32 %v872_v8, %v854_v17 }
 0xb6d   : > { %v857_v35 = vpop.permute.xlu1 %856  ;;  %v860_v39 = vpop.permute.xlu0 %859 }
 0xb6e   : > { %v858_v37 = vsel %vm236_vm0, %v857_v35, %v836_v34  ;;  %v861_v43 = vsel %vm236_vm0, %v860_v39, %v837_v32  ;;  %v855_v35 = vsel %vm235_vm7, %v853_v10, 0.0 }
 0xb6f   : > { %862 = vrot.lane.b32.xlu1 %v858_v37, %s1779_s5 }
 0xb73   : > { %864 = vrot.lane.b32.xlu1 %v861_v43, %s1779_s5 }
 0xbe1   : > { %v863_v33 = vpop.permute.xlu1 %862 }
 0xbe2   : > { %v866_v46 = vsel %vm236_vm0, %v863_v33, %v836_v34  ;;  %v875_v34 = vadd.f32 %v873_v21, %v855_v35 }
 0xbe3   : > { %v868_v51 = vsel %vm249_vm1, %v866_v46, 0.0  ;;  %v870_v59 = vsel %vm256_vm2, %v866_v46, 0.0 }
 0xbe4   : > { %878 = vrot.lane.b32.xlu0 %v868_v51, %s1782_s14 }
 0xbe5   : > { %v865_v55 = vpop.permute.xlu1 %864 }
 0xbe6   : > { %v867_v53 = vsel %vm236_vm0, %v865_v55, %v837_v32 }
 0xbe7   : > { %v869_v60 = vsel %vm249_vm1, %v867_v53, 0.0  ;;  %v871_v61 = vsel %vm256_vm2, %v867_v53, 0.0 }
 0xbe8   : > { %888 = vrot.lane.b32.xlu0 %v870_v59, %s1783_s17  ;;  %880 = vrot.lane.b32.xlu1 %v869_v60, %s1782_s14 }
 0xbec   : > { %890 = vrot.lane.b32.xlu1 %v871_v61, %s1783_s17 }
 0xc56   : > { %v879_v14 = vpop.permute.xlu0 %878 }
 0xc57   : > { %v884_v26 = vadd.f32 %v879_v14, %v874_v18 }
 0xc5a   : > { %v889_v29 = vpop.permute.xlu0 %888  ;;  %v881_v31 = vpop.permute.xlu1 %880 }
 0xc5b   : > { %v894_v37 = vadd.f32 %v889_v29, %v884_v26  ;;  %v885_v43 = vadd.f32 %v881_v31, %v875_v34 }
 0xc5d   : > { %v896_v39 = vmul.f32 0.2, %v894_v37 }
 0xc5e   : > { %v891_v33 = vpop.permute.xlu1 %890 }
 0xc5f   : > { %v1542_v46 = vadd.f32 -0.5, %v896_v39  ;;  %v895_v51 = vadd.f32 %v891_v33, %v885_v43 }
 0xc61   : > { %v2419_v55 = vmax.f32 %v1542_v46, 0.0  ;;  %v897_v53 = vmul.f32 0.2, %v895_v51 }
 0xc63   : > { %v1543_v59 = vadd.f32 -0.5, %v897_v53  ;;  %v902_v32 = vsel %vm327_vm9, %v2419_v55, -inf  ;;  %v915_v61 = vsel %vm327_vm9, %v2419_v55, inf }
 0xc64   : > { %903 = vmax.xlane.f32.xlu0 %v902_v32 }
 0xc65   : > { %v2423_v60 = vmax.f32 %v1543_v59, 0.0 }
 0xc67   : > { %v905_v63 = vsel %vm327_vm9, %v2423_v60, -inf  ;;  %v918_v0 = vsel %vm327_vm9, %v2423_v60, inf }
 0xc68   : > { %916 = vmin.xlane.f32.xlu0 %v915_v61  ;;  %906 = vmax.xlane.f32.xlu1 %v905_v63 }
 0xc6c   : > { %919 = vmin.xlane.f32.xlu0 %v918_v0 }
 0xcf1   : > { %v904_v1 = vpop.xlane.xlu0 %903 }
 0xcf5   : > { %v917_v2 = vpop.xlane.xlu0 %916  ;;  %v907_v3 = vpop.xlane.xlu1 %906 }
 0xcf6   : > { %v908_v4 = vmax.f32 %v904_v1, %v907_v3 }
 0xcf8   : > { %v909_v5 = vrot.slane %v908_v4, 4 }
 0xcf9   : > { %v920_v6 = vpop.xlane.xlu0 %919 }
 0xcfa   : > { %v910_v8 = vmax.f32 %v908_v4, %v909_v5  ;;  %v921_v13 = vmin.f32 %v917_v2, %v920_v6 }
 0xcfc   : > { %v911_v14 = vrot.slane %v910_v8, 2  ;;  %v922_v17 = vrot.slane %v921_v13, 4 }
 0xcfe   : > { %v912_v18 = vmax.f32 %v910_v8, %v911_v14  ;;  %v923_v10 = vmin.f32 %v921_v13, %v922_v17 }
 0xd00   : > { %v924_v21 = vrot.slane %v923_v10, 2  ;;  %v913_v26 = vrot.slane %v912_v18, 1 }
 0xd02   : > { %v925_v29 = vmin.f32 %v923_v10, %v924_v21  ;;  %v914_v35 = vmax.f32 %v912_v18, %v913_v26 }
 0xd04   : > { %v926_v31 = vrot.slane %v925_v29, 1 }
 0xd06   : > { %v2431_v37 = vmin.f32 %v925_v29, %v926_v31 }
 0xd08   : > { %v2434_v34 = vsub.f32 %v914_v35, %v2431_v37  ;;  %v945_v43 = vsub.f32 %v2419_v55, %v2431_v37  ;;  %v946_v33 = vsub.f32 %v2423_v60, %v2431_v37 }
 0xd0a   : > { %vm2840_vm15 = vcmp.ne.f32.partialorder %v2434_v34, 0.0 }
 0xd0b   : > { %v943_v39 = vsel %vm2840_vm15, %v2434_v34, 1.0 }
 0xd0c   : > { %1633 = vrcp.f32 %v943_v39 }
 0xd16   : > { %v2444_v46 = vpop.eup %1633 }
 0xd17   : > { %v948_v51 = vmul.f32 %v2444_v46, %v946_v33  ;;  %v947_v53 = vmul.f32 %v2444_v46, %v945_v43 }
 0xd19   : > { %v952_v59 = vsel %vm2840_vm15, %v948_v51, %v2423_v60  ;;  %v951_v32 = vsel %vm2840_vm15, %v947_v53, %v2419_v55 }
 0xd1a   : > { %974 = vrot.lane.b32.xlu0 %v952_v59, %s1779_s5  ;;  %971 = vrot.lane.b32.xlu1 %v951_v32, %s1779_s5  ;;  %v960_v17 = vrot.slane %v952_v59, 7  ;;  %v959_v18 = vrot.slane %v951_v32, 7  ;;  %v966_v21 = vrot.slane %v952_v59, 1  ;;  %v965_v26 = vrot.slane %v951_v32, 1 }
 0xd1c   : > { %v962_v10 = vsel %vm208_vm3, %v960_v17, %v959_v18  ;;  %v961_v31 = vsel %vm208_vm3, %v959_v18, %v960_v17  ;;  %v967_v35 = vsel %vm223_vm4, %v965_v26, %v966_v21 }
 0xd1d   : > { %v963_v29 = vsel %vm219_vm6, %v962_v10, 0.0  ;;  %v964_v43 = vsel %vm220_vm5, %v961_v31, 0.0  ;;  %v969_v51 = vsel %vm234_vm8, %v967_v35, 0.0 }
 0xd1e   : > { %v987_v39 = vadd.f32 %v963_v29, %v951_v32 }
 0xd20   : > { %v989_v53 = vadd.f32 %v987_v39, %v969_v51 }
 0xd8c   : > { %v972_v61 = vpop.permute.xlu1 %971  ;;  %v975_v0 = vpop.permute.xlu0 %974 }
 0xd8d   : > { %v973_v63 = vsel %vm236_vm0, %v972_v61, %v951_v32  ;;  %v976_v1 = vsel %vm236_vm0, %v975_v0, %v952_v59  ;;  %v968_v61 = vsel %vm223_vm4, %v966_v21, %v965_v26 }
 0xd8e   : > { %977 = vrot.lane.b32.xlu1 %v973_v63, %s1779_s5  ;;  %v988_v63 = vadd.f32 %v964_v43, %v952_v59 }
 0xd92   : > { %979 = vrot.lane.b32.xlu1 %v976_v1, %s1779_s5 }
 0xe00   : > { %v978_v2 = vpop.permute.xlu1 %977 }
 0xe01   : > { %v981_v3 = vsel %vm236_vm0, %v978_v2, %v951_v32 }
 0xe02   : > { %v983_v4 = vsel %vm249_vm1, %v981_v3, 0.0  ;;  %v985_v8 = vsel %vm256_vm2, %v981_v3, 0.0  ;;  %v970_v3 = vsel %vm235_vm7, %v968_v61, 0.0 }
 0xe03   : > { %993 = vrot.lane.b32.xlu0 %v983_v4, %s1782_s14  ;;  %v990_v32 = vadd.f32 %v988_v63, %v970_v3 }
 0xe04   : > { %v980_v5 = vpop.permute.xlu1 %979 }
 0xe05   : > { %v982_v6 = vsel %vm236_vm0, %v980_v5, %v952_v59 }
 0xe06   : > { %v984_v13 = vsel %vm249_vm1, %v982_v6, 0.0  ;;  %v986_v14 = vsel %vm256_vm2, %v982_v6, 0.0 }
 0xe07   : > { %1003 = vrot.lane.b32.xlu0 %v985_v8, %s1783_s17  ;;  %995 = vrot.lane.b32.xlu1 %v984_v13, %s1782_s14 }
 0xe0b   : > { %1005 = vrot.lane.b32.xlu1 %v986_v14, %s1783_s17 }
 0xe75   : > { %v994_v33 = vpop.permute.xlu0 %993 }
 0xe76   : > { %v999_v0 = vadd.f32 %v994_v33, %v989_v53 }
 0xe79   : > { %v1004_v1 = vpop.permute.xlu0 %1003  ;;  %v996_v2 = vpop.permute.xlu1 %995 }
 0xe7a   : > { %v1009_v4 = vadd.f32 %v1004_v1, %v999_v0  ;;  %v1000_v6 = vadd.f32 %v996_v2, %v990_v32 }
 0xe7c   : > { %v1011_v5 = vmul.f32 0.2, %v1009_v4 }
 0xe7d   : > { %v1006_v8 = vpop.permute.xlu1 %1005 }
 0xe7e   : > { %v1544_v13 = vadd.f32 -0.5, %v1011_v5  ;;  %v1010_v14 = vadd.f32 %v1006_v8, %v1000_v6 }
 0xe80   : > { %v2490_v17 = vmax.f32 %v1544_v13, 0.0  ;;  %v1012_v18 = vmul.f32 0.2, %v1010_v14 }
 0xe82   : > { %v1545_v10 = vadd.f32 -0.5, %v1012_v18  ;;  %v1017_v59 = vsel %vm327_vm9, %v2490_v17, -inf  ;;  %v1030_v26 = vsel %vm327_vm9, %v2490_v17, inf  ;;  %v1043_v58 = vsel %vm327_vm9, %v2490_v17, 0.0 }
 0xe83   : > { %1018 = vmax.xlane.f32.xlu0 %v1017_v59 }
 0xe84   : > { %v2494_v21 = vmax.f32 %v1545_v10, 0.0 }
 0xe86   : > { %v1020_v29 = vsel %vm327_vm9, %v2494_v21, -inf  ;;  %v1033_v31 = vsel %vm327_vm9, %v2494_v21, inf }
 0xe87   : > { %1031 = vmin.xlane.f32.xlu0 %v1030_v26  ;;  %1021 = vmax.xlane.f32.xlu1 %v1020_v29 }
 0xe8b   : > { %1034 = vmin.xlane.f32.xlu0 %v1033_v31 }
 0xf10   : > { %v1019_v35 = vpop.xlane.xlu0 %1018 }
 0xf14   : > { %v1032_v39 = vpop.xlane.xlu0 %1031  ;;  %v1022_v43 = vpop.xlane.xlu1 %1021 }
 0xf15   : > { %v1023_v33 = vmax.f32 %v1019_v35, %v1022_v43 }
 0xf17   : > { %v1024_v51 = vrot.slane %v1023_v33, 4 }
 0xf18   : > { %v1035_v53 = vpop.xlane.xlu0 %1034 }
 0xf19   : > { %v1025_v61 = vmax.f32 %v1023_v33, %v1024_v51  ;;  %v1036_v63 = vmin.f32 %v1032_v39, %v1035_v53 }
 0xf1b   : > { %v1026_v0 = vrot.slane %v1025_v61, 2  ;;  %v1037_v1 = vrot.slane %v1036_v63, 4 }
 0xf1d   : > { %v1027_v2 = vmax.f32 %v1025_v61, %v1026_v0  ;;  %v1038_v3 = vmin.f32 %v1036_v63, %v1037_v1 }
 0xf1f   : > { %v1039_v4 = vrot.slane %v1038_v3, 2  ;;  %v1028_v32 = vrot.slane %v1027_v2, 1 }
 0xf21   : > { %v1040_v5 = vmin.f32 %v1038_v3, %v1039_v4  ;;  %v1029_v8 = vmax.f32 %v1027_v2, %v1028_v32 }
 0xf23   : > { %v1041_v6 = vrot.slane %v1040_v5, 1 }
 0xf25   : > { %v2502_v13 = vmin.f32 %v1040_v5, %v1041_v6 }
 0xf27   : > { %2856 = vst [vmem:[#allocation11_spill] sm:$0xff] %v2502_v13  ;;  %v2505_v14 = vsub.f32 %v1029_v8, %v2502_v13  ;;  %v1060_v10 = vsub.f32 %v2490_v17, %v2502_v13  ;;  %v1061_v59 = vsub.f32 %v2494_v21, %v2502_v13 }
 0xf29   : > { %2857 = vst [vmem:[#allocation12_spill] sm:$0xff] %v2505_v14  ;;  %vm2842_vm15 = vcmp.ne.f32.partialorder %v2505_v14, 0.0 }
 0xf2a   : > { %v1058_v18 = vsel %vm2842_vm15, %v2505_v14, 1.0 }
 0xf2b   : > { %1635 = vrcp.f32 %v1058_v18 }
 0xf35   : > { %v2515_v26 = vpop.eup %1635 }
 0xf36   : > { %2858 = vst [vmem:[#allocation13_spill] sm:$0xff] %v2515_v26  ;;  %v1063_v29 = vmul.f32 %v2515_v26, %v1061_v59  ;;  %v1062_v31 = vmul.f32 %v2515_v26, %v1060_v10 }
 0xf38   : > { %v1067_v35 = vsel %vm2842_vm15, %v1063_v29, %v2494_v21  ;;  %v1066_v39 = vsel %vm2842_vm15, %v1062_v31, %v2490_v17 }
 0xf39   : > { %1089 = vrot.lane.b32.xlu0 %v1067_v35, %s1779_s5  ;;  %1086 = vrot.lane.b32.xlu1 %v1066_v39, %s1779_s5  ;;  %v1075_v5 = vrot.slane %v1067_v35, 7  ;;  %v1074_v6 = vrot.slane %v1066_v39, 7  ;;  %v1081_v18 = vrot.slane %v1067_v35, 1  ;;  %v1080_v10 = vrot.slane %v1066_v39, 1 }
 0xf3b   : > { %v1077_v8 = vsel %vm208_vm3, %v1075_v5, %v1074_v6  ;;  %v1076_v29 = vsel %vm208_vm3, %v1074_v6, %v1075_v5  ;;  %v1082_v31 = vsel %vm223_vm4, %v1080_v10, %v1081_v18 }
 0xf3c   : > { %v1078_v59 = vsel %vm219_vm6, %v1077_v8, 0.0 }
 0xfab   : > { %v1087_v43 = vpop.permute.xlu1 %1086  ;;  %v1090_v51 = vpop.permute.xlu0 %1089 }
 0xfac   : > { %v1088_v33 = vsel %vm236_vm0, %v1087_v43, %v1066_v39  ;;  %v1091_v53 = vsel %vm236_vm0, %v1090_v51, %v1067_v35  ;;  %v1102_v43 = vadd.f32 %v1078_v59, %v1066_v39 }
 0xfad   : > { %1092 = vrot.lane.b32.xlu1 %v1088_v33, %s1779_s5  ;;  %v1079_v33 = vsel %vm220_vm5, %v1076_v29, 0.0 }
 0xfb1   : > { %1094 = vrot.lane.b32.xlu1 %v1091_v53, %s1779_s5  ;;  %v1084_v53 = vsel %vm234_vm8, %v1082_v31, 0.0 }
0x101f   : > { %v1093_v61 = vpop.permute.xlu1 %1092 }
0x1020   : > { %v1096_v63 = vsel %vm236_vm0, %v1093_v61, %v1066_v39  ;;  %v1104_v61 = vadd.f32 %v1102_v43, %v1084_v53 }
0x1021   : > { %v1098_v0 = vsel %vm249_vm1, %v1096_v63, 0.0  ;;  %v1100_v3 = vsel %vm256_vm2, %v1096_v63, 0.0  ;;  %v1083_v63 = vsel %vm223_vm4, %v1081_v18, %v1080_v10 }
0x1022   : > { %1108 = vrot.lane.b32.xlu0 %v1098_v0, %s1782_s14  ;;  %v1103_v0 = vadd.f32 %v1079_v33, %v1067_v35 }
0x1023   : > { %v1095_v1 = vpop.permute.xlu1 %1094 }
0x1024   : > { %v1097_v2 = vsel %vm236_vm0, %v1095_v1, %v1067_v35 }
0x1025   : > { %v1099_v4 = vsel %vm249_vm1, %v1097_v2, 0.0  ;;  %v1101_v32 = vsel %vm256_vm2, %v1097_v2, 0.0 }
0x1026   : > { %1118 = vrot.lane.b32.xlu0 %v1100_v3, %s1783_s17  ;;  %1110 = vrot.lane.b32.xlu1 %v1099_v4, %s1782_s14  ;;  %v1085_v4 = vsel %vm235_vm7, %v1083_v63, 0.0 }
0x1027   : > { %v1105_v39 = vadd.f32 %v1103_v0, %v1085_v4 }
0x102a   : > { %1120 = vrot.lane.b32.xlu1 %v1101_v32, %s1783_s17 }
0x1094   : > { %v1109_v51 = vpop.permute.xlu0 %1108 }
0x1095   : > { %v1114_v1 = vadd.f32 %v1109_v51, %v1104_v61 }
0x1098   : > { %v1119_v2 = vpop.permute.xlu0 %1118  ;;  %v1111_v3 = vpop.permute.xlu1 %1110 }
0x1099   : > { %v1124_v32 = vadd.f32 %v1119_v2, %v1114_v1  ;;  %v1115_v6 = vadd.f32 %v1111_v3, %v1105_v39 }
0x109b   : > { %v1126_v5 = vmul.f32 0.2, %v1124_v32 }
0x109c   : > { %v1121_v8 = vpop.permute.xlu1 %1120 }
0x109d   : > { %v1546_v59 = vadd.f32 -0.5, %v1126_v5  ;;  %v1125_v29 = vadd.f32 %v1121_v8, %v1115_v6 }
0x109f   : > { %v2561_v14 = vmax.f32 %v1546_v59, 0.0  ;;  %v1127_v31 = vmul.f32 0.2, %v1125_v29 }
0x10a1   : > { %v1547_v43 = vadd.f32 -0.5, %v1127_v31  ;;  %v1132_v35 = vsel %vm327_vm9, %v2561_v14, -inf  ;;  %v1145_v10 = vsel %vm327_vm9, %v2561_v14, inf }
0x10a2   : > { %1133 = vmax.xlane.f32.xlu0 %v1132_v35 }
0x10a3   : > { %v2565_v18 = vmax.f32 %v1547_v43, 0.0 }
0x10a5   : > { %v1135_v33 = vsel %vm327_vm9, %v2565_v18, -inf  ;;  %v1148_v51 = vsel %vm327_vm9, %v2565_v18, inf }
0x10a6   : > { %1146 = vmin.xlane.f32.xlu0 %v1145_v10  ;;  %1136 = vmax.xlane.f32.xlu1 %v1135_v33 }
0x10aa   : > { %1149 = vmin.xlane.f32.xlu0 %v1148_v51 }
0x112f   : > { %v1134_v53 = vpop.xlane.xlu0 %1133 }
0x1133   : > { %v1147_v61 = vpop.xlane.xlu0 %1146  ;;  %v1137_v63 = vpop.xlane.xlu1 %1136 }
0x1134   : > { %v1138_v0 = vmax.f32 %v1134_v53, %v1137_v63 }
0x1136   : > { %v1139_v1 = vrot.slane %v1138_v0, 4 }
0x1137   : > { %v1150_v2 = vpop.xlane.xlu0 %1149 }
0x1138   : > { %v1140_v3 = vmax.f32 %v1138_v0, %v1139_v1  ;;  %v1151_v4 = vmin.f32 %v1147_v61, %v1150_v2 }
0x113a   : > { %v1141_v32 = vrot.slane %v1140_v3, 2  ;;  %v1152_v39 = vrot.slane %v1151_v4, 4 }
0x113c   : > { %v1142_v5 = vmax.f32 %v1140_v3, %v1141_v32  ;;  %v1153_v6 = vmin.f32 %v1151_v4, %v1152_v39 }
0x113e   : > { %v1154_v8 = vrot.slane %v1153_v6, 2  ;;  %v1143_v59 = vrot.slane %v1142_v5, 1 }
0x1140   : > { %v1155_v29 = vmin.f32 %v1153_v6, %v1154_v8  ;;  %v1144_v43 = vmax.f32 %v1142_v5, %v1143_v59 }
0x1142   : > { %v1156_v31 = vrot.slane %v1155_v29, 1 }
0x1144   : > { %v2573_v35 = vmin.f32 %v1155_v29, %v1156_v31 }
0x1146   : > { %2859 = vst [vmem:[#allocation14_spill] sm:$0xff] %v2573_v35  ;;  %v2576_v10 = vsub.f32 %v1144_v43, %v2573_v35  ;;  %v1175_v51 = vsub.f32 %v2561_v14, %v2573_v35  ;;  %v1176_v53 = vsub.f32 %v2565_v18, %v2573_v35 }
0x1148   : > { %2860 = vst [vmem:[#allocation15_spill] sm:$0xff] %v2576_v10  ;;  %vm2848_vm15 = vcmp.ne.f32.partialorder %v2576_v10, 0.0 }
0x1149   : > { %v1173_v33 = vsel %vm2848_vm15, %v2576_v10, 1.0 }
0x114a   : > { %1637 = vrcp.f32 %v1173_v33 }
0x1154   : > { %v2586_v61 = vpop.eup %1637 }
0x1155   : > { %2861 = vst [vmem:[#allocation16_spill] sm:$0xff] %v2586_v61  ;;  %v1178_v63 = vmul.f32 %v2586_v61, %v1176_v53  ;;  %v1177_v0 = vmul.f32 %v2586_v61, %v1175_v51 }
0x1157   : > { %v1182_v1 = vsel %vm2848_vm15, %v1178_v63, %v2565_v18  ;;  %v1181_v2 = vsel %vm2848_vm15, %v1177_v0, %v2561_v14 }
0x1158   : > { %1204 = vrot.lane.b32.xlu0 %v1182_v1, %s1779_s5  ;;  %1201 = vrot.lane.b32.xlu1 %v1181_v2, %s1779_s5  ;;  %v1190_v51 = vrot.slane %v1182_v1, 7  ;;  %v1189_v53 = vrot.slane %v1181_v2, 7  ;;  %v1196_v0 = vrot.slane %v1182_v1, 1 }
0x115a   : > { %v1192_v63 = vsel %vm208_vm3, %v1190_v51, %v1189_v53 }
0x11ca   : > { %v1202_v3 = vpop.permute.xlu1 %1201  ;;  %v1205_v32 = vpop.permute.xlu0 %1204 }
0x11cb   : > { %v1203_v4 = vsel %vm236_vm0, %v1202_v3, %v1181_v2  ;;  %v1206_v39 = vsel %vm236_vm0, %v1205_v32, %v1182_v1  ;;  %v1195_v3 = vrot.slane %v1181_v2, 1  ;;  %v1191_v32 = vsel %vm208_vm3, %v1189_v53, %v1190_v51 }
0x11cc   : > { %1207 = vrot.lane.b32.xlu1 %v1203_v4, %s1779_s5  ;;  %v1193_v4 = vsel %vm219_vm6, %v1192_v63, 0.0 }
0x11d0   : > { %1209 = vrot.lane.b32.xlu1 %v1206_v39, %s1779_s5  ;;  %v1197_v39 = vsel %vm223_vm4, %v1195_v3, %v1196_v0 }
0x123e   : > { %v1208_v5 = vpop.permute.xlu1 %1207 }
0x123f   : > { %v1211_v6 = vsel %vm236_vm0, %v1208_v5, %v1181_v2  ;;  %v1217_v5 = vadd.f32 %v1193_v4, %v1181_v2 }
0x1240   : > { %v1213_v8 = vsel %vm249_vm1, %v1211_v6, 0.0  ;;  %v1215_v31 = vsel %vm256_vm2, %v1211_v6, 0.0  ;;  %v1194_v6 = vsel %vm220_vm5, %v1191_v32, 0.0 }
0x1241   : > { %1223 = vrot.lane.b32.xlu0 %v1213_v8, %s1782_s14 }
0x1242   : > { %v1210_v59 = vpop.permute.xlu1 %1209 }
0x1243   : > { %v1212_v29 = vsel %vm236_vm0, %v1210_v59, %v1182_v1  ;;  %v1199_v59 = vsel %vm234_vm8, %v1197_v39, 0.0 }
0x1244   : > { %v1214_v43 = vsel %vm249_vm1, %v1212_v29, 0.0  ;;  %v1216_v33 = vsel %vm256_vm2, %v1212_v29, 0.0  ;;  %v1219_v29 = vadd.f32 %v1217_v5, %v1199_v59 }
0x1245   : > { %1233 = vrot.lane.b32.xlu0 %v1215_v31, %s1783_s17  ;;  %1225 = vrot.lane.b32.xlu1 %v1214_v43, %s1782_s14  ;;  %v1198_v31 = vsel %vm223_vm4, %v1196_v0, %v1195_v3  ;;  %v1218_v43 = vadd.f32 %v1194_v6, %v1182_v1 }
0x1246   : > { %v1200_v51 = vsel %vm235_vm7, %v1198_v31, 0.0 }
0x1247   : > { %v1220_v2 = vadd.f32 %v1218_v43, %v1200_v51 }
0x1249   : > { %1235 = vrot.lane.b32.xlu1 %v1216_v33, %s1783_s17 }
0x12b3   : > { %v1224_v8 = vpop.permute.xlu0 %1223 }
0x12b4   : > { %v1229_v33 = vadd.f32 %v1224_v8, %v1219_v29 }
0x12b7   : > { %v1234_v63 = vpop.permute.xlu0 %1233  ;;  %v1226_v10 = vpop.permute.xlu1 %1225 }
0x12b8   : > { %v1239_v53 = vadd.f32 %v1234_v63, %v1229_v33  ;;  %v1230_v61 = vadd.f32 %v1226_v10, %v1220_v2 }
0x12ba   : > { %v1241_v4 = vmul.f32 0.2, %v1239_v53 }
0x12bb   : > { %v1236_v32 = vpop.permute.xlu1 %1235 }
0x12bc   : > { %v1548_v35 = vadd.f32 -0.5, %v1241_v4  ;;  %v1240_v26 = vadd.f32 %v1236_v32, %v1230_v61 }
0x12be   : > { %v2632_v13 = vmax.f32 %v1548_v35, 0.0  ;;  %v1242_v39 = vmul.f32 0.2, %v1240_v26 }
0x12c0   : > { %v1549_v5 = vadd.f32 -0.5, %v1242_v39  ;;  %v1247_v1 = vsel %vm327_vm9, %v2632_v13, -inf  ;;  %v1260_v3 = vsel %vm327_vm9, %v2632_v13, inf }
0x12c1   : > { %1248 = vmax.xlane.f32.xlu0 %v1247_v1 }
0x12c2   : > { %v2636_v0 = vmax.f32 %v1549_v5, 0.0 }
0x12c4   : > { %v1250_v6 = vsel %vm327_vm9, %v2636_v0, -inf  ;;  %v1263_v35 = vsel %vm327_vm9, %v2636_v0, inf }
0x12c5   : > { %1261 = vmin.xlane.f32.xlu0 %v1260_v3  ;;  %1251 = vmax.xlane.f32.xlu1 %v1250_v6 }
0x12c9   : > { %1264 = vmin.xlane.f32.xlu0 %v1263_v35 }
0x134e   : > { %v1249_v26 = vpop.xlane.xlu0 %1248 }
0x1352   : > { %v1262_v10 = vpop.xlane.xlu0 %1261  ;;  %v1252_v61 = vpop.xlane.xlu1 %1251 }
0x1353   : > { %v1253_v8 = vmax.f32 %v1249_v26, %v1252_v61 }
0x1355   : > { %v1254_v59 = vrot.slane %v1253_v8, 4 }
0x1356   : > { %v1265_v29 = vpop.xlane.xlu0 %1264 }
0x1357   : > { %v1255_v31 = vmax.f32 %v1253_v8, %v1254_v59  ;;  %v1266_v43 = vmin.f32 %v1262_v10, %v1265_v29 }
0x1359   : > { %v1256_v33 = vrot.slane %v1255_v31, 2  ;;  %v1267_v63 = vrot.slane %v1266_v43, 4 }
0x135b   : > { %v1257_v51 = vmax.f32 %v1255_v31, %v1256_v33  ;;  %v1268_v53 = vmin.f32 %v1266_v43, %v1267_v63 }
0x135d   : > { %v1269_v2 = vrot.slane %v1268_v53, 2  ;;  %v1258_v4 = vrot.slane %v1257_v51, 1 }
0x135f   : > { %v1270_v32 = vmin.f32 %v1268_v53, %v1269_v2  ;;  %v1259_v5 = vmax.f32 %v1257_v51, %v1258_v4 }
0x1361   : > { %v1271_v39 = vrot.slane %v1270_v32, 1 }
0x1363   : > { %v2644_v1 = vmin.f32 %v1270_v32, %v1271_v39 }
0x1365   : > { %v2647_v3 = vsub.f32 %v1259_v5, %v2644_v1  ;;  %v1290_v35 = vsub.f32 %v2632_v13, %v2644_v1  ;;  %v1291_v26 = vsub.f32 %v2636_v0, %v2644_v1 }
0x1367   : > { %vm1287_vm15 = vcmp.ne.f32.partialorder %v2647_v3, 0.0 }
0x1368   : > { %v1288_v6 = vsel %vm1287_vm15, %v2647_v3, 1.0 }
0x1369   : > { %1639 = vrcp.f32 %v1288_v6 }
0x1373   : > { %v2657_v10 = vpop.eup %1639 }
0x1374   : > { %v1293_v61 = vmul.f32 %v2657_v10, %v1291_v26  ;;  %v1292_v8 = vmul.f32 %v2657_v10, %v1290_v35  ;;  %v468_v35 = vsel %vm327_vm9, %v2135_v41, 0.0  ;;  %v354_v26 = vsel %vm327_vm9, %v2066_v23, 0.0 }
0x1375   : > { %v583_v41 = vsel %vm327_vm9, %v2206_v7, 0.0  ;;  %v701_v23 = vsel %vm327_vm9, %v2281_v57, 0.0  ;;  %v931_v7 = vsel %vm327_vm9, %v2423_v60, 0.0  ;;  %v928_v57 = vsel %vm327_vm9, %v2419_v55, 0.0 }
0x1376   : > { %v1297_v59 = vsel %vm1287_vm15, %v1293_v61, %v2636_v0  ;;  %v1296_v29 = vsel %vm1287_vm15, %v1292_v8, %v2632_v13  ;;  %v471_v61 = vsel %vm327_vm9, %v2139_v45, 0.0  ;;  %v816_v45 = vsel %vm327_vm9, %v2352_v44, 0.0 }
0x1377   : > { %1319 = vrot.lane.b32.xlu0 %v1297_v59, %s1779_s5  ;;  %1316 = vrot.lane.b32.xlu1 %v1296_v29, %s1779_s5  ;;  %v1305_v8 = vrot.slane %v1297_v59, 7  ;;  %v1310_v44 = vrot.slane %v1296_v29, 1 }
0x13e9   : > { %v1317_v31 = vpop.permute.xlu1 %1316  ;;  %v1320_v33 = vpop.permute.xlu0 %1319 }
0x13ea   : > { %v1318_v43 = vsel %vm236_vm0, %v1317_v31, %v1296_v29  ;;  %v1321_v63 = vsel %vm236_vm0, %v1320_v33, %v1297_v59  ;;  %v1304_v31 = vrot.slane %v1296_v29, 7 }
0x13eb   : > { %1322 = vrot.lane.b32.xlu1 %v1318_v43, %s1779_s5  ;;  %v1311_v43 = vrot.slane %v1297_v59, 1 }
0x13ec   : > { %v1307_v50 = vsel %vm208_vm3, %v1305_v8, %v1304_v31  ;;  %v1306_v38 = vsel %vm208_vm3, %v1304_v31, %v1305_v8  ;;  %v1273_v8 = vsel %vm327_vm9, %v2632_v13, 0.0  ;;  %v1161_v31 = vsel %vm327_vm9, %v2565_v18, 0.0 }
0x13ed   : > { %v1308_v33 = vsel %vm219_vm6, %v1307_v50, 0.0  ;;  %v1312_v60 = vsel %vm223_vm4, %v1310_v44, %v1311_v43  ;;  %v1309_v55 = vsel %vm220_vm5, %v1306_v38, 0.0  ;;  %v1276_v50 = vsel %vm327_vm9, %v2636_v0, 0.0 }
0x13ee   : > { %v1333_v56 = vadd.f32 %v1309_v55, %v1297_v59 }
0x13ef   : > { %1324 = vrot.lane.b32.xlu1 %v1321_v63, %s1779_s5  ;;  %v1332_v63 = vadd.f32 %v1308_v33, %v1296_v29 }
0x145d   : > { %v1323_v51 = vpop.permute.xlu1 %1322 }
0x145e   : > { %v1326_v53 = vsel %vm236_vm0, %v1323_v51, %v1296_v29 }
0x145f   : > { %v1328_v2 = vsel %vm249_vm1, %v1326_v53, 0.0  ;;  %v1330_v39 = vsel %vm256_vm2, %v1326_v53, 0.0  ;;  %v1314_v53 = vsel %vm234_vm8, %v1312_v60, 0.0 }
0x1460   : > { %1338 = vrot.lane.b32.xlu0 %v1328_v2, %s1782_s14  ;;  %v1334_v2 = vadd.f32 %v1332_v63, %v1314_v53 }
0x1461   : > { %v1325_v4 = vpop.permute.xlu1 %1324 }
0x1462   : > { %v1327_v32 = vsel %vm236_vm0, %v1325_v4, %v1297_v59  ;;  %v1313_v4 = vsel %vm223_vm4, %v1311_v43, %v1310_v44  ;;  %vm2862_vm0 = vcmp.ne.f32.partialorder %v2434_v34, 0.0 }
0x1463   : > { %v1329_v5 = vsel %vm249_vm1, %v1327_v32, 0.0  ;;  %v1331_v6 = vsel %vm256_vm2, %v1327_v32, 0.0 }
0x1464   : > { %1348 = vrot.lane.b32.xlu0 %v1330_v39, %s1783_s17  ;;  %1340 = vrot.lane.b32.xlu1 %v1329_v5, %s1782_s14 }
0x1468   : > { %1350 = vrot.lane.b32.xlu1 %v1331_v6, %s1783_s17  ;;  %v1315_v6 = vsel %vm235_vm7, %v1313_v4, 0.0 }
0x1469   : > { %v1335_v29 = vadd.f32 %v1333_v56, %v1315_v6 }
0x1483   : > { %469 = vadd.xlane.f32.xlu0 %v468_v35 }
0x1487   : > { %355 = vadd.xlane.f32.xlu0 %v354_v26 }
0x148b   : > { %358 = vadd.xlane.f32.xlu0 %v357_v25 }
0x148c   : > { %472 = vadd.xlane.f32.xlu1 %v471_v61 }
0x148f   : > { %587 = vadd.xlane.f32.xlu0 %v586_v27 }
0x1490   : > { %584 = vadd.xlane.f32.xlu1 %v583_v41 }
0x1493   : > { %702 = vadd.xlane.f32.xlu0 %v701_v23 }
0x1494   : > { %699 = vadd.xlane.f32.xlu1 %v698_v22 }
0x1497   : > { %817 = vadd.xlane.f32.xlu0 %v816_v45 }
0x1498   : > { %814 = vadd.xlane.f32.xlu1 %v813_v15 }
0x149b   : > { %932 = vadd.xlane.f32.xlu0 %v931_v7  ;;  %v1158_v7 = vsel %vm327_vm9, %v2561_v14, 0.0 }
0x149c   : > { %929 = vadd.xlane.f32.xlu1 %v928_v57  ;;  %v1046_v57 = vsel %vm327_vm9, %v2494_v21, 0.0 }
0x14d2   : > { %v1339_v51 = vpop.permute.xlu0 %1338 }
0x14d3   : > { %v1344_v32 = vadd.f32 %v1339_v51, %v1334_v2 }
0x14d6   : > { %v1349_v39 = vpop.permute.xlu0 %1348  ;;  %v1341_v5 = vpop.permute.xlu1 %1340 }
0x14d7   : > { %v1354_v35 = vadd.f32 %v1349_v39, %v1344_v32  ;;  %v1345_v52 = vadd.f32 %v1341_v5, %v1335_v29 }
0x14d9   : > { %v1356_v26 = vmul.f32 0.2, %v1354_v35 }
0x14da   : > { %v1351_v25 = vpop.permute.xlu1 %1350 }
0x14db   : > { %v1550_v61 = vadd.f32 -0.5, %v1356_v26  ;;  %v1355_v27 = vadd.f32 %v1351_v25, %v1345_v52 }
0x14dd   : > { %v1360_v62 = vmax.f32 %v1550_v61, 0.0  ;;  %v1357_v41 = vmul.f32 0.2, %v1355_v27 }
0x14df   : > { %v1551_v23 = vadd.f32 -0.5, %v1357_v41  ;;  %v1362_v36 = vsel %vm327_vm9, %v1360_v62, -inf  ;;  %v1375_v22 = vsel %vm327_vm9, %v1360_v62, inf  ;;  %v1388_v17 = vsel %vm327_vm9, %v1360_v62, 0.0 }
0x14e0   : > { %1363 = vmax.xlane.f32.xlu1 %v1362_v36  ;;  %v379_v62 = vmul.f32 256.0, %v2076_v48 }
0x14e1   : > { %v1361_v59 = vmax.f32 %v1551_v23, 0.0  ;;  %v493_v23 = vmul.f32 256.0, %v2147_v9 }
0x14e3   : > { %v1365_v45 = vsel %vm327_vm9, %v1361_v59, -inf  ;;  %v1378_v15 = vsel %vm327_vm9, %v1361_v59, inf  ;;  %v1391_v14 = vsel %vm327_vm9, %v1361_v59, 0.0 }
0x14e4   : > { %1376 = vmin.xlane.f32.xlu1 %v1375_v22  ;;  %1366 = vmax.xlane.f32.xlu0 %v1365_v45 }
0x14e8   : > { %1044 = vadd.xlane.f32.xlu1 %v1043_v58  ;;  %1379 = vmin.xlane.f32.xlu0 %v1378_v15 }
0x14ec   : > { %1159 = vadd.xlane.f32.xlu1 %v1158_v7  ;;  %1047 = vadd.xlane.f32.xlu0 %v1046_v57 }
0x14f0   : > { %1274 = vadd.xlane.f32.xlu1 %v1273_v8  ;;  %1162 = vadd.xlane.f32.xlu0 %v1161_v31 }
0x14f4   : > { %1389 = vadd.xlane.f32.xlu1 %v1388_v17  ;;  %1277 = vadd.xlane.f32.xlu0 %v1276_v50 }
0x14f8   : > { %1392 = vadd.xlane.f32.xlu0 %v1391_v14  ;;  %v608_v14 = vmul.f32 256.0, %v2218_v40 }
0x1510   : > { %v470_v21 = vpop.xlane.xlu0 %469 }
0x1514   : > { %v356_v43 = vpop.xlane.xlu0 %355 }
0x1518   : > { %v359_v44 = vpop.xlane.xlu0 %358 }
0x1519   : > { %v360_v33 = vadd.f32 %v359_v44, %v356_v43  ;;  %v473_v13 = vpop.xlane.xlu1 %472 }
0x151a   : > { %v474_v38 = vadd.f32 %v473_v13, %v470_v21 }
0x151b   : > { %v361_v60 = vrot.slane %v360_v33, 4 }
0x151c   : > { %v475_v18 = vrot.slane %v474_v38, 4  ;;  %v588_v63 = vpop.xlane.xlu0 %587 }
0x151d   : > { %v362_v55 = vadd.f32 %v361_v60, %v360_v33  ;;  %v585_v51 = vpop.xlane.xlu1 %584 }
0x151e   : > { %v476_v53 = vadd.f32 %v475_v18, %v474_v38  ;;  %v589_v2 = vadd.f32 %v588_v63, %v585_v51 }
0x151f   : > { %v363_v4 = vrot.slane %v362_v55, 2 }
0x1520   : > { %v477_v0 = vrot.slane %v476_v53, 2  ;;  %v590_v56 = vrot.slane %v589_v2, 4  ;;  %v703_v32 = vpop.xlane.xlu0 %702 }
0x1521   : > { %v364_v39 = vadd.f32 %v363_v4, %v362_v55  ;;  %v700_v5 = vpop.xlane.xlu1 %699  ;;  %v723_v55 = vmul.f32 256.0, %v2289_v11  ;;  %v838_v11 = vmul.f32 256.0, %v2360_v19 }
0x1522   : > { %v478_v6 = vadd.f32 %v477_v0, %v476_v53  ;;  %v591_v35 = vadd.f32 %v590_v56, %v589_v2  ;;  %v704_v29 = vadd.f32 %v703_v32, %v700_v5 }
0x1523   : > { %v365_v26 = vrot.slane %v364_v39, 1 }
0x1524   : > { %v479_v52 = vrot.slane %v478_v6, 1  ;;  %v592_v25 = vrot.slane %v591_v35, 2  ;;  %v705_v61 = vrot.slane %v704_v29, 4  ;;  %v818_v27 = vpop.xlane.xlu0 %817 }
0x1525   : > { %v366_v41 = vadd.f32 %v365_v26, %v364_v39  ;;  %v815_v36 = vpop.xlane.xlu1 %814 }
0x1526   : > { %v480_v59 = vadd.f32 %v479_v52, %v478_v6  ;;  %v593_v22 = vadd.f32 %v592_v25, %v591_v35  ;;  %v706_v45 = vadd.f32 %v705_v61, %v704_v29  ;;  %v819_v58 = vadd.f32 %v818_v27, %v815_v36 }
0x1527   : > { %v380_v15 = vsub.f32 %v366_v41, %v379_v62  ;;  %v953_v61 = vmul.f32 256.0, %v2431_v37 }
0x1528   : > { %v494_v7 = vsub.f32 %v480_v59, %v493_v23  ;;  %v594_v57 = vrot.slane %v593_v22, 1  ;;  %v707_v8 = vrot.slane %v706_v45, 2  ;;  %v820_v31 = vrot.slane %v819_v58, 4  ;;  %v933_v17 = vpop.xlane.xlu0 %932 }
0x1529   : > { %v381_v50 = vmul.f32 %v2089_v54, %v380_v15  ;;  %v930_v21 = vpop.xlane.xlu1 %929 }
0x152a   : > { %v495_v48 = vmul.f32 %v2160_v16, %v494_v7  ;;  %v595_v43 = vadd.f32 %v594_v57, %v593_v22  ;;  %v708_v9 = vadd.f32 %v707_v8, %v706_v45  ;;  %v821_v44 = vadd.f32 %v820_v31, %v819_v58 }
0x152b   : > { %v934_v33 = vadd.f32 %v933_v17, %v930_v21  ;;  %v382_v54 = vsel %vm368_vm10, %v381_v50, %v366_v41 }
0x152c   : > { %v496_v13 = vsel %vm482_vm11, %v495_v48, %v480_v59  ;;  %v609_v38 = vsub.f32 %v595_v43, %v608_v14  ;;  %v709_v60 = vrot.slane %v708_v9, 1  ;;  %v822_v18 = vrot.slane %v821_v44, 2 }
0x152d   : > { %v497_v63 = vmul.f32 4.0, %v496_v13  ;;  %v935_v51 = vrot.slane %v934_v33, 4 }
0x152e   : > { %v610_v40 = vmul.f32 %v2231_v47, %v609_v38  ;;  %v710_v16 = vadd.f32 %v709_v60, %v708_v9  ;;  %v823_v53 = vadd.f32 %v822_v18, %v821_v44 }
0x152f   : > { %v498_v2 = vadd.f32 %v497_v63, %v382_v54  ;;  %v936_v4 = vadd.f32 %v935_v51, %v934_v33 }
0x1530   : > { %v611_v12 = vsel %vm597_vm12, %v610_v40, %v595_v43  ;;  %v724_v0 = vsub.f32 %v710_v16, %v723_v55  ;;  %v824_v56 = vrot.slane %v823_v53, 1 }
0x1531   : > { %v612_v32 = vmul.f32 9.0, %v611_v12  ;;  %v937_v39 = vrot.slane %v936_v4, 2 }
0x1532   : > { %v725_v5 = vmul.f32 %v2302_v30, %v724_v0  ;;  %v825_v6 = vadd.f32 %v824_v56, %v823_v53  ;;  %v2863_v0 = vld [vmem:[#allocation11_spill] sm:$0xff] }
0x1533   : > { %v613_v49 = vadd.f32 %v612_v32, %v498_v2  ;;  %v938_v35 = vadd.f32 %v937_v39, %v936_v4  ;;  %v1068_v56 = vmul.f32 256.0, %v2863_v0 }
0x1534   : > { %v726_v47 = vsel %vm712_vm13, %v725_v5, %v710_v16  ;;  %v839_v29 = vsub.f32 %v825_v6, %v838_v11 }
0x1535   : > { %v727_v26 = vmul.f32 16.0, %v726_v47  ;;  %v939_v52 = vrot.slane %v938_v35, 1 }
0x1536   : > { %v840_v42 = vmul.f32 %v2373_v28, %v839_v29 }
0x1537   : > { %v728_v25 = vadd.f32 %v727_v26, %v613_v49  ;;  %v940_v27 = vadd.f32 %v939_v52, %v938_v35 }
0x1538   : > { %v841_v30 = vsel %vm827_vm14, %v840_v42, %v825_v6 }
0x1539   : > { %v842_v62 = vmul.f32 25.0, %v841_v30  ;;  %v954_v19 = vsub.f32 %v940_v27, %v953_v61 }
0x153b   : > { %v843_v41 = vadd.f32 %v842_v62, %v728_v25  ;;  %v955_v23 = vmul.f32 %v2444_v46, %v954_v19  ;;  %v2864_v25 = vld [vmem:[#allocation13_spill] sm:$0xff] }
0x153d   : > { %v956_v24 = vsel %vm2862_vm0, %v955_v23, %v940_v27  ;;  %v2865_v27 = vld [vmem:[#allocation14_spill] sm:$0xff]  ;;  %v2866_v23 = vld [vmem:[#allocation12_spill] sm:$0xff] }
0x153e   : > { %v957_v36 = vmul.f32 36.0, %v956_v24  ;;  %v1183_v30 = vmul.f32 256.0, %v2865_v27  ;;  %vm2867_vm2 = vcmp.ne.f32.partialorder %v2866_v23, 0.0 }
0x1540   : > { %v2769_v59 = vadd.f32 %v957_v36, %v843_v41 }
0x156d   : > { %v1364_v22 = vpop.xlane.xlu1 %1363 }
0x1571   : > { %v1377_v28 = vpop.xlane.xlu1 %1376  ;;  %v1367_v45 = vpop.xlane.xlu0 %1366 }
0x1572   : > { %v1368_v58 = vmax.f32 %v1364_v22, %v1367_v45 }
0x1574   : > { %v1369_v37 = vrot.slane %v1368_v58, 4 }
0x1575   : > { %v1045_v15 = vpop.xlane.xlu1 %1044  ;;  %v1380_v7 = vpop.xlane.xlu0 %1379 }
0x1576   : > { %v1370_v20 = vmax.f32 %v1368_v58, %v1369_v37  ;;  %v1381_v57 = vmin.f32 %v1377_v28, %v1380_v7  ;;  %v2868_v58 = vld [vmem:[#allocation16_spill] sm:$0xff] }
0x1578   : > { %v1371_v8 = vrot.slane %v1370_v20, 2  ;;  %v1382_v31 = vrot.slane %v1381_v57, 4 }
0x1579   : > { %v1160_v17 = vpop.xlane.xlu1 %1159  ;;  %v1048_v50 = vpop.xlane.xlu0 %1047 }
0x157a   : > { %v1372_v46 = vmax.f32 %v1370_v20, %v1371_v8  ;;  %v1383_v14 = vmin.f32 %v1381_v57, %v1382_v31  ;;  %v1049_v34 = vadd.f32 %v1048_v50, %v1045_v15  ;;  %v1298_v20 = vmul.f32 256.0, %v2644_v1  ;;  %v2869_v8 = vld [vmem:[#allocation15_spill] sm:$0xff] }
0x157b   : > { %vm2870_vm3 = vcmp.ne.f32.partialorder %v2869_v8, 0.0 }
0x157c   : > { %v1384_v21 = vrot.slane %v1383_v14, 2  ;;  %v1050_v48 = vrot.slane %v1049_v34, 4  ;;  %v1373_v43 = vrot.slane %v1372_v46, 1 }
0x157d   : > { %v1163_v9 = vpop.xlane.xlu0 %1162  ;;  %v1275_v38 = vpop.xlane.xlu1 %1274 }
0x157e   : > { %v1385_v44 = vmin.f32 %v1383_v14, %v1384_v21  ;;  %v1051_v33 = vadd.f32 %v1050_v48, %v1049_v34  ;;  %v1164_v13 = vadd.f32 %v1163_v9, %v1160_v17  ;;  %v1374_v55 = vmax.f32 %v1372_v46, %v1373_v43 }
0x1580   : > { %v1386_v60 = vrot.slane %v1385_v44, 1  ;;  %v1052_v18 = vrot.slane %v1051_v33, 2  ;;  %v1165_v63 = vrot.slane %v1164_v13, 4 }
0x1581   : > { %v1278_v51 = vpop.xlane.xlu0 %1277  ;;  %v1390_v32 = vpop.xlane.xlu1 %1389 }
0x1582   : > { %v1387_v54 = vmin.f32 %v1385_v44, %v1386_v60  ;;  %v1053_v40 = vadd.f32 %v1052_v18, %v1051_v33  ;;  %v1166_v16 = vadd.f32 %v1165_v63, %v1164_v13  ;;  %v1279_v53 = vadd.f32 %v1278_v51, %v1275_v38 }
0x1584   : > { %v1401_v2 = vsub.f32 %v1374_v55, %v1387_v54  ;;  %v1054_v4 = vrot.slane %v1053_v40, 1  ;;  %v1167_v12 = vrot.slane %v1166_v16, 2  ;;  %v1280_v39 = vrot.slane %v1279_v53, 4 }
0x1585   : > { %v1393_v5 = vpop.xlane.xlu0 %1392  ;;  %v1405_v14 = vmul.f32 256.0, %v1387_v54 }
0x1586   : > { %vm1402_vm1 = vcmp.ne.f32.partialorder %v1401_v2, 0.0  ;;  %v1055_v11 = vadd.f32 %v1054_v4, %v1053_v40  ;;  %v1168_v6 = vadd.f32 %v1167_v12, %v1166_v16  ;;  %v1394_v49 = vadd.f32 %v1393_v5, %v1390_v32 }
0x1587   : > { %v1281_v35 = vadd.f32 %v1280_v39, %v1279_v53  ;;  %v1403_v47 = vsel %vm1402_vm1, %v1401_v2, 1.0 }
0x1588   : > { %v1069_v29 = vsub.f32 %v1055_v11, %v1068_v56  ;;  %v1169_v26 = vrot.slane %v1168_v6, 1  ;;  %v1395_v52 = vrot.slane %v1394_v49, 4  ;;  %1641 = vrcp.f32 %v1403_v47 }
0x1589   : > { %v1282_v42 = vrot.slane %v1281_v35, 2 }
0x158a   : > { %v1070_v61 = vmul.f32 %v2864_v25, %v1069_v29  ;;  %v1170_v62 = vadd.f32 %v1169_v26, %v1168_v6  ;;  %v1396_v19 = vadd.f32 %v1395_v52, %v1394_v49 }
0x158b   : > { %v1283_v41 = vadd.f32 %v1282_v42, %v1281_v35 }
0x158c   : > { %v1071_v24 = vsel %vm2867_vm2, %v1070_v61, %v1055_v11  ;;  %v1184_v36 = vsub.f32 %v1170_v62, %v1183_v30  ;;  %v1397_v22 = vrot.slane %v1396_v19, 2 }
0x158d   : > { %v1072_v28 = vmul.f32 49.0, %v1071_v24  ;;  %v1284_v45 = vrot.slane %v1283_v41, 1 }
0x158e   : > { %v1185_v37 = vmul.f32 %v2868_v58, %v1184_v36  ;;  %v1398_v15 = vadd.f32 %v1397_v22, %v1396_v19 }
0x158f   : > { %v1073_v7 = vadd.f32 %v1072_v28, %v2769_v59  ;;  %v1285_v57 = vadd.f32 %v1284_v45, %v1283_v41 }
0x1590   : > { %v1186_v31 = vsel %vm2870_vm3, %v1185_v37, %v1170_v62  ;;  %v1399_v17 = vrot.slane %v1398_v15, 1 }
0x1591   : > { %v1187_v50 = vmul.f32 64.0, %v1186_v31  ;;  %v1299_v46 = vsub.f32 %v1285_v57, %v1298_v20 }
0x1592   : > { %v1400_v34 = vadd.f32 %v1399_v17, %v1398_v15  ;;  %v1642_v9 = vpop.eup %1641 }
0x1593   : > { %v1188_v21 = vadd.f32 %v1187_v50, %v1073_v7  ;;  %v1300_v48 = vmul.f32 %v2657_v10, %v1299_v46 }
0x1594   : > { %v1406_v43 = vsub.f32 %v1400_v34, %v1405_v14 }
0x1595   : > { %v1301_v1 = vsel %vm1287_vm15, %v1300_v48, %v1285_v57 }
0x1596   : > { %v1302_v59 = vmul.f32 81.0, %v1301_v1  ;;  %v1407_v44 = vmul.f32 %v1642_v9, %v1406_v43 }
0x1598   : > { %v1408_v33 = vsel %vm1402_vm1, %v1407_v44, %v1400_v34  ;;  %v1303_v13 = vadd.f32 %v1302_v59, %v1188_v21 }
0x1599   : > { %v1409_v38 = vmul.f32 100.0, %v1408_v33 }
0x159b   : > { %v1410_v60 = vadd.f32 %v1409_v38, %v1303_v13 }
0x159d   : > { %1411 = vst [vmem:[%s200_s24] sm:$0x1] %v1410_v60 }
0x159e   : > { %1716 = shalt.err (!%p1713_p11)
}
0x159f   : > { %s1717_s30 = scalar_lea.hbm %s2791_s7, 16  ;;  %s1721_s29 = scalar_lea.hbm %s2837_s2, 32 }
0x15a0   : > { %p1718_p3 = scmp.ne.s32.totalorder %s2791_s7, %s1717_s30  ;;  %p1722_p2 = scmp.lt.u32.totalorder %s2791_s7, %s2837_s2 }
0x15a1   : > { %p1723_p4 = scmp.lt.u32.totalorder %s1721_s29, %s1717_s30  ;;  %p1725_p13 = scmp.lt.u32.totalorder %s1717_s30, %s2791_s7 }
0x15a2   : > { %p1719_p8 = pnand %p1718_p3, %p2871_p1 }
0x15a3   : > { %p1724_p6 = por %p1723_p4, %p1722_p2 }
0x15a4   : > { %p1720_p0 = pneg %p1719_p8 }
0x15a5   : > { %p1726_p12 = por %p1725_p13, %p1724_p6 }
0x15a7   : > { %p1727_p10 = pnand %p1726_p12, %p1720_p0 }
0x15a9   : > { %1730 = shalt.err (!%p1727_p10)
}
0x15aa   : > { %1569 = dma.vmem_to_hbm [thread:$0]  (%p2871_p1), %s2793_s26, 16, %s2791_s7, %s1413_s8  }
0x15ab PF: > { %s1437_s6 = sand.u32 1, %s1761_s9   ;;  %p2872_p5 = scmp.ne.s32.totalorder %s2852_s22, 0 }
0x15ac   : > { %p2873_p7 = scmp.ge.s32.totalorder %s1773_s12, 2  ;;  %s1438_s14 = scalar_lea.sflag [#allocation4], %s1437_s6 }
0x15ae   : > { %p1579_p9 = pnand %p2873_p7, %p2872_p5 }
0x15b0   : > { %1756 = dma.done.wait (!%p1579_p9), %s1438_s14, 16  }
0x15b1   : > { %1758 = vsyncadd (!%p1579_p9), %s1438_s14, 4294967280  ;;  %p18_p11 = scmp.ge.s32.totalorder %s1825_s15, 4   ;;  %s2874_s9 = smov %s1765_s10 }
0x15b2   : > { %s2875_s10 = smov %s1769_s11  ;;  %s2876_s11 = smov %s1837_s18 }
0x15b3   : > { %s2877_s12 = smov %s1825_s15  ;;  %20 = sbr.rel (!%p18_p11) target bundleno = 7 (0x7), region = 86 }
0x15ba   :  { %1442 = vsyncpa [#allocation3], 1 }
0x15bb   :  { %1444 = vsyncpa [#allocation3 + $0x1], 1 }
0x15bc   :  { %1445 = vsyncpa [#allocation6], 1 }
0x15bd   :  { %1447 = vsyncpa [#allocation6 + $0x1], 1 }
0x15be   :  { %1448 = vsyncpa [#allocation4], 1 }
0x15bf   :  { %1450 = vsyncpa [#allocation4 + $0x1], 1 }

</bundles_post_ra>
